<compile_context>
chip_gen: v7x
topology: tpu7x:2x2x1
jax: 0.10.0
libtpu: 0.0.40
codegen_flags: <defaults>
</compile_context>

<pallas_src>
import jax
import jax.numpy as jnp
from jax.experimental import pallas as pl
from jax.experimental.pallas import tpu as pltpu


def _stn_kernel(x_ref,
                w1_ref, b1_ref,
                w2_ref, b2_ref,
                w3_ref, b3_ref,
                w4_ref, b4_ref,
                w5_ref, b5_ref,
                w6_ref, b6_ref,
                o_ref, gmax_ref):
    nt = pl.program_id(1)

    # --- init running max for this batch block ---
    @pl.when(nt == 0)
    def _init():
        # Layer-3 activations are post-ReLU (>= 0), so 0 is a valid identity.
        gmax_ref[...] = jnp.zeros_like(gmax_ref)

    TB, TN, C = x_ref.shape
    # Flatten (TB, TN, C) -> (TB*TN, C) so the conv matmuls get a big M dim.
    x = x_ref[...].reshape(TB * TN, C)                                     # bf16

    # --- Conv_ReLU stack (Conv1d k=1 == matmul over channels) ---
    # BN scale is folded into the weights host-side: only bias + ReLU here.
    h = jnp.dot(x, w1_ref[...], preferred_element_type=jnp.float32)       # (M, 64)
    h = jnp.maximum(h + b1_ref[...], 0.0)

    h = jnp.dot(h.astype(jnp.bfloat16), w2_ref[...],
                preferred_element_type=jnp.float32)                        # (M, 128)
    h = jnp.maximum(h + b2_ref[...], 0.0)

    h = jnp.dot(h.astype(jnp.bfloat16), w3_ref[...],
                preferred_element_type=jnp.float32)                        # (M, 1024)
    h = jnp.maximum(h + b3_ref[...], 0.0)

    # --- streaming MaxPool over the points dimension ---
    # On v6e/v7x the scratch is bf16 -> the dominant (M,1024) tensor is stored
    # in bf16 (half the vst/vld traffic and VMEM); on v5e it stays f32.
    # max(round(x)) == round(max(x)) (rounding is monotonic), so no drift.
    h = h.astype(gmax_ref.dtype)
    tile_max = jnp.max(h.reshape(TB, TN, 1024), axis=1)                    # (TB, 1024)
    gmax_ref[...] = jnp.maximum(gmax_ref[...], tile_max)

    # --- on the last point-tile: batched fc stack with folded BN + ReLU ---
    @pl.when(nt == pl.num_programs(1) - 1)
    def _finalize():
        g = gmax_ref[...].astype(jnp.bfloat16)                             # (TB, 1024)
        f = jnp.dot(g, w4_ref[...], preferred_element_type=jnp.float32)    # (TB, 512)
        f = jnp.maximum(f + b4_ref[...], 0.0)

        f = jnp.dot(f.astype(jnp.bfloat16), w5_ref[...],
                    preferred_element_type=jnp.float32)                    # (TB, 256)
        f = jnp.maximum(f + b5_ref[...], 0.0)

        out = jnp.dot(f.astype(jnp.bfloat16), w6_ref[...],
                      preferred_element_type=jnp.float32)                  # (TB, C*C)
        # b6 already includes the flattened identity matrix.
        o_ref[...] = (out + b6_ref[...]).astype(o_ref.dtype)


def _const_spec(shape):
    """Whole-array block, same for every grid step (weights / biases).
    The grid-invariant index map means the pipeliner does not re-DMA these."""
    nd = len(shape)
    return pl.BlockSpec(shape, lambda i, j: (0,) * nd)


def _device_config():
    """Per-generation tiling / dtype / VMEM-limit choices."""
    kind = ""
    try:
        kind = jax.devices()[0].device_kind.lower()
    except Exception:
        pass
    if "v5" in kind:
        # v5e/v5p: 128 MiB VMEM, MXU-bound, no bf16 VPU -> f32 pooling path,
        # big tiles to amortize step overhead, raise the 16 MiB scoped default.
        return dict(bf16_pool=False, max_rows=8192,
                    vmem_limit_bytes=100 * 1024 * 1024, min_parallel_blocks=1)
    if "v6" in kind:
        # v6e: 128 MiB VMEM, bf16 VPU -> bf16 pooling, 4096-row tiles.
        return dict(bf16_pool=True, max_rows=4096,
                    vmem_limit_bytes=96 * 1024 * 1024, min_parallel_blocks=1)
    if "v7" in kind or "7x" in kind:
        # v7x: only 64 MiB VMEM/TC and 2 TCs -> cap tile, keep >=2 batch blocks.
        return dict(bf16_pool=True, max_rows=4096,
                    vmem_limit_bytes=48 * 1024 * 1024, min_parallel_blocks=2)
    # Unknown chip: conservative settings that run everywhere.
    return dict(bf16_pool=True, max_rows=2048,
                vmem_limit_bytes=48 * 1024 * 1024, min_parallel_blocks=2)


def _pick_batch_tile(B, cap=32, min_blocks=1):
    # On multi-TensorCore chips keep >= min_blocks batch blocks so the
    # "parallel" axis can be sharded across cores (only when B is big enough
    # that splitting does not shrink the MXU M dim badly).
    if min_blocks > 1 and B >= 16:
        cap = min(cap, B // min_blocks)
    if B <= cap:
        return B
    divisors = [t for t in range(1, cap + 1) if B % t == 0]
    aligned = [t for t in divisors if t % 8 == 0]
    return max(aligned) if aligned else max(divisors)


def _pick_point_tile(N, TB, max_rows):
    """Pick TN so TB*TN <= max_rows, preferring sublane-aligned divisors."""
    if TB * N <= max_rows:
        return N
    cap = max(8, max_rows // TB)
    divisors = [t for t in range(1, min(N, cap) + 1) if N % t == 0]
    for align in (16, 8):
        aligned = [t for t in divisors if t % align == 0]
        if aligned:
            return max(aligned)
    # Fallback: largest divisor <= cap (never the full N), so VMEM stays
    # bounded even for awkward point counts.
    return max(divisors)


def stnkd_forward(x_bnc, params, *, batch_tile=None, point_tile=None, config=None):
    """x_bnc: (B, N, C) bfloat16.  Returns (B, C, C) float32."""
    B, N, C = x_bnc.shape
    C2 = C * C
    cfg = config if config is not None else _device_config()

    TB = batch_tile if batch_tile is not None else _pick_batch_tile(
        B, min_blocks=cfg["min_parallel_blocks"])
    TN = point_tile if point_tile is not None else _pick_point_tile(
        N, TB, cfg["max_rows"])
    NB, NT = B // TB, N // TN

    pool_dtype = jnp.bfloat16 if cfg["bf16_pool"] else jnp.float32

    in_specs = [pl.BlockSpec((TB, TN, C), lambda i, j: (i, j, 0))]
    for p in params:
        in_specs.append(_const_spec(p.shape))

    # Advisory cost estimate so XLA can schedule surrounding ops around this
    # compute-heavy custom call.
    flops = (2 * B * N * (C * 64 + 64 * 128 + 128 * 1024)
             + 2 * B * (1024 * 512 + 512 * 256 + 256 * C2))
    bytes_accessed = (int(x_bnc.size) * x_bnc.dtype.itemsize
                      + B * C2 * 4
                      + sum(int(p.size) * p.dtype.itemsize for p in params))
    cost = pl.CostEstimate(flops=int(flops), transcendentals=0,
                           bytes_accessed=int(bytes_accessed))

    out = pl.pallas_call(
        _stn_kernel,
        out_shape=jax.ShapeDtypeStruct((B, C2), jnp.float32),
        grid_spec=pltpu.PrefetchScalarGridSpec(
            num_scalar_prefetch=0,
            grid=(NB, NT),
            in_specs=in_specs,
            out_specs=pl.BlockSpec((TB, C2), lambda i, j: (i, 0)),
            scratch_shapes=[pltpu.VMEM((TB, 1024), pool_dtype)],
        ),
        compiler_params=pltpu.CompilerParams(
            dimension_semantics=("parallel", "arbitrary"),
            vmem_limit_bytes=cfg["vmem_limit_bytes"]),
        cost_estimate=cost,
    )(x_bnc, *params)
    return out.reshape(B, C, C)


def _fold_bn(gamma, beta, mean, var, eps=1e-5):
    scale = gamma / jnp.sqrt(var + eps)
    bias = beta - mean * scale
    return scale, bias


def make_params(key, num_channels):
    """Deterministic synthetic parameters matching STNkd's layer shapes.
    Conv1d(k=1) weights (C_out, C_in, 1) and Linear weights (C_out, C_in) are
    stored transposed as (C_in, C_out) bf16 matmul matrices with the eval-mode
    BN scale folded in; biases are f32 (1, C_out) row vectors (BN-folded).
    The last bias includes the flattened identity matrix."""
    C = num_channels
    dims = [(C, 64), (64, 128), (128, 1024), (1024, 512), (512, 256), (256, C * C)]
    keys = jax.random.split(key, 64)
    ki = iter(range(64))

    params = []
    for li, (cin, cout) in enumerate(dims):
        w = jax.random.normal(keys[next(ki)], (cin, cout), jnp.float32) * 0.05
        conv_bias = jax.random.normal(keys[next(ki)], (cout,), jnp.float32) * 0.05
        if li < 5:
            # BN layer follows: fold both the BN scale and the conv/linear bias.
            gamma = 1.0 + 0.1 * jax.random.normal(keys[next(ki)], (cout,), jnp.float32)
            beta = 0.1 * jax.random.normal(keys[next(ki)], (cout,), jnp.float32)
            mean = 0.1 * jax.random.normal(keys[next(ki)], (cout,), jnp.float32)
            var = jnp.abs(1.0 + 0.1 * jax.random.normal(keys[next(ki)], (cout,), jnp.float32))
            scale, bias = _fold_bn(gamma, beta, mean, var)
            # (x@W + cb)*s + b  ==  x@(W*s) + (cb*s + b)
            w = w * scale[None, :]
            bias = bias + conv_bias * scale
            params += [w.astype(jnp.bfloat16), bias.reshape(1, cout)]
        else:
            # Last fc: no BN; fold the flattened identity (iden) into the bias.
            iden = jnp.eye(C, dtype=jnp.float32).reshape(-1)
            params += [w.astype(jnp.bfloat16), (conv_bias + iden).reshape(1, cout)]
    return tuple(params)


def stnkd_reference(x_bnc, params):
    """Pure-JAX reference (same bf16-in / f32-accumulate numerics)."""
    (w1, b1, w2, b2, w3, b3, w4, b4, w5, b5, w6, b6) = params

    def mm(a, w):
        return jnp.dot(a.astype(jnp.bfloat16), w, preferred_element_type=jnp.float32)

    h = jnp.maximum(mm(x_bnc, w1) + b1, 0.0)
    h = jnp.maximum(mm(h, w2) + b2, 0.0)
    h = jnp.maximum(mm(h, w3) + b3, 0.0)
    g = jnp.max(h, axis=1)                        # (B, 1024)
    f = jnp.maximum(mm(g, w4) + b4, 0.0)
    f = jnp.maximum(mm(f, w5) + b5, 0.0)
    out = mm(f, w6) + b6
    C = x_bnc.shape[-1]
    return out.reshape(-1, C, C)


if __name__ == "__main__":
    num_channels = 4     # "k" of STNkd
    num_points = 16
    batch = 2

    key = jax.random.PRNGKey(0)
    kx, kp = jax.random.split(key)

    # PyTorch input would be (B, num_channels, num_points); build it that way,
    # transpose to the kernel layout (B, num_points, num_channels), cast bf16.
    x_ncl = jax.random.normal(kx, (batch, num_channels, num_points), jnp.float32)
    x_bnc = jnp.transpose(x_ncl, (0, 2, 1)).astype(jnp.bfloat16)

    params = make_params(kp, num_channels)

    out = stnkd_forward(x_bnc, params)
    out = jax.block_until_ready(out)

    ref = stnkd_reference(x_bnc, params)
    assert out.shape == (batch, num_channels, num_channels)
    assert jnp.allclose(out, ref, atol=1e-2, rtol=1e-2), "mismatch vs reference"

    print("KERNEL_OK")
</pallas_src>

<mosaic_0001>
module attributes {stable_mosaic.version = 11 : i64} {
  func.func @_stn_kernel(%arg0: i32, %arg1: i32, %arg2: memref<2x16x4xbf16, #tpu.memory_space<vmem>>, %arg3: memref<4x64xbf16, #tpu.memory_space<vmem>>, %arg4: memref<1x64xf32, #tpu.memory_space<vmem>>, %arg5: memref<64x128xbf16, #tpu.memory_space<vmem>>, %arg6: memref<1x128xf32, #tpu.memory_space<vmem>>, %arg7: memref<128x1024xbf16, #tpu.memory_space<vmem>>, %arg8: memref<1x1024xf32, #tpu.memory_space<vmem>>, %arg9: memref<1024x512xbf16, #tpu.memory_space<vmem>>, %arg10: memref<1x512xf32, #tpu.memory_space<vmem>>, %arg11: memref<512x256xbf16, #tpu.memory_space<vmem>>, %arg12: memref<1x256xf32, #tpu.memory_space<vmem>>, %arg13: memref<256x16xbf16, #tpu.memory_space<vmem>>, %arg14: memref<1x16xf32, #tpu.memory_space<vmem>>, %arg15: memref<2x16xf32, #tpu.memory_space<vmem>>, %arg16: memref<2x1024xbf16, #tpu.memory_space<vmem>>) attributes {dimension_semantics = [#tpu.dimension_semantics<parallel>, #tpu.dimension_semantics<arbitrary>], iteration_bounds = array<i64: 1, 1>, scalar_prefetch = 0 : i64, scratch_operands = 1 : i64, tpu.core_type = #tpu.core_type<tc>, window_params = [{transform_indices = @transform_0, window_bounds = array<i64: 2, 16, 4>}, {pipeline_mode = #tpu.pipeline_mode<synchronous>, transform_indices = @transform_1, window_bounds = array<i64: 4, 64>}, {pipeline_mode = #tpu.pipeline_mode<synchronous>, transform_indices = @transform_2, window_bounds = array<i64: 1, 64>}, {pipeline_mode = #tpu.pipeline_mode<synchronous>, transform_indices = @transform_3, window_bounds = array<i64: 64, 128>}, {pipeline_mode = #tpu.pipeline_mode<synchronous>, transform_indices = @transform_4, window_bounds = array<i64: 1, 128>}, {pipeline_mode = #tpu.pipeline_mode<synchronous>, transform_indices = @transform_5, window_bounds = array<i64: 128, 1024>}, {pipeline_mode = #tpu.pipeline_mode<synchronous>, transform_indices = @transform_6, window_bounds = array<i64: 1, 1024>}, {pipeline_mode = #tpu.pipeline_mode<synchronous>, transform_indices = @transform_7, window_bounds = array<i64: 1024, 512>}, {pipeline_mode = #tpu.pipeline_mode<synchronous>, transform_indices = @transform_8, window_bounds = array<i64: 1, 512>}, {pipeline_mode = #tpu.pipeline_mode<synchronous>, transform_indices = @transform_9, window_bounds = array<i64: 512, 256>}, {pipeline_mode = #tpu.pipeline_mode<synchronous>, transform_indices = @transform_10, window_bounds = array<i64: 1, 256>}, {pipeline_mode = #tpu.pipeline_mode<synchronous>, transform_indices = @transform_11, window_bounds = array<i64: 256, 16>}, {pipeline_mode = #tpu.pipeline_mode<synchronous>, transform_indices = @transform_12, window_bounds = array<i64: 1, 16>}, {transform_indices = @transform_13, window_bounds = array<i64: 2, 16>}]} {
    %c0_i32 = arith.constant 0 : i32
    %0 = arith.cmpi eq, %arg1, %c0_i32 : i32
    %1 = arith.extui %0 : i1 to i32
    %c0_i32_0 = arith.constant 0 : i32
    %2 = arith.cmpi ne, %1, %c0_i32_0 : i32
    scf.if %2 {
      %cst_27 = arith.constant 0.000000e+00 : bf16
      %37 = vector.broadcast %cst_27 : bf16 to vector<2x1024xbf16>
      %c0_28 = arith.constant 0 : index
      %c0_29 = arith.constant 0 : index
      %38 = vector.load %arg16[%c0_28, %c0_29] : memref<2x1024xbf16, #tpu.memory_space<vmem>>, vector<2x1024xbf16>
      tpu.vector_store %arg16[%c0_28, %c0_29], %37 {strides = array<i32>} : memref<2x1024xbf16, #tpu.memory_space<vmem>>, vector<2x1024xbf16>,
    } else {
    }
    %c0 = arith.constant 0 : index
    %c0_1 = arith.constant 0 : index
    %c0_2 = arith.constant 0 : index
    %3 = vector.load %arg2[%c0, %c0_1, %c0_2] : memref<2x16x4xbf16, #tpu.memory_space<vmem>>, vector<2x16x4xbf16>
    %4 = vector.shape_cast %3 : vector<2x16x4xbf16> to vector<32x4xbf16>
    %c0_3 = arith.constant 0 : index
    %c0_4 = arith.constant 0 : index
    %5 = vector.load %arg3[%c0_3, %c0_4] : memref<4x64xbf16, #tpu.memory_space<vmem>>, vector<4x64xbf16>
    %cst = arith.constant dense<0.000000e+00> : vector<32x64xf32>
    %6 = tpu.matmul %4, %5, %cst {dimension_numbers = #tpu.dot_dimension_numbers<[1], [0], [0], [1], [0, 0, 1, 1], [], []>} : vector<32x4xbf16>, vector<4x64xbf16>, vector<32x64xf32> -> vector<32x64xf32>
    %c0_5 = arith.constant 0 : index
    %c0_6 = arith.constant 0 : index
    %7 = vector.load %arg4[%c0_5, %c0_6] : memref<1x64xf32, #tpu.memory_space<vmem>>, vector<1x64xf32>
    %8 = vector.broadcast %7 : vector<1x64xf32> to vector<32x64xf32>
    %9 = arith.addf %6, %8 : vector<32x64xf32>
    %cst_7 = arith.constant 0.000000e+00 : f32
    %10 = vector.broadcast %cst_7 : f32 to vector<32x64xf32>
    %11 = arith.maximumf %9, %10 : vector<32x64xf32>
    %12 = arith.truncf %11 : vector<32x64xf32> to vector<32x64xbf16>
    %c0_8 = arith.constant 0 : index
    %c0_9 = arith.constant 0 : index
    %13 = vector.load %arg5[%c0_8, %c0_9] : memref<64x128xbf16, #tpu.memory_space<vmem>>, vector<64x128xbf16>
    %cst_10 = arith.constant dense<0.000000e+00> : vector<32x128xf32>
    %14 = tpu.matmul %12, %13, %cst_10 {dimension_numbers = #tpu.dot_dimension_numbers<[1], [0], [0], [1], [0, 0, 1, 1], [], []>} : vector<32x64xbf16>, vector<64x128xbf16>, vector<32x128xf32> -> vector<32x128xf32>
    %c0_11 = arith.constant 0 : index
    %c0_12 = arith.constant 0 : index
    %15 = vector.load %arg6[%c0_11, %c0_12] : memref<1x128xf32, #tpu.memory_space<vmem>>, vector<1x128xf32>
    %16 = vector.broadcast %15 : vector<1x128xf32> to vector<32x128xf32>
    %17 = arith.addf %14, %16 : vector<32x128xf32>
    %cst_13 = arith.constant 0.000000e+00 : f32
    %18 = vector.broadcast %cst_13 : f32 to vector<32x128xf32>
    %19 = arith.maximumf %17, %18 : vector<32x128xf32>
    %20 = arith.truncf %19 : vector<32x128xf32> to vector<32x128xbf16>
    %c0_14 = arith.constant 0 : index
    %c0_15 = arith.constant 0 : index
    %21 = vector.load %arg7[%c0_14, %c0_15] : memref<128x1024xbf16, #tpu.memory_space<vmem>>, vector<128x1024xbf16>
    %cst_16 = arith.constant dense<0.000000e+00> : vector<32x1024xf32>
    %22 = tpu.matmul %20, %21, %cst_16 {dimension_numbers = #tpu.dot_dimension_numbers<[1], [0], [0], [1], [0, 0, 1, 1], [], []>} : vector<32x128xbf16>, vector<128x1024xbf16>, vector<32x1024xf32> -> vector<32x1024xf32>
    %c0_17 = arith.constant 0 : index
    %c0_18 = arith.constant 0 : index
    %23 = vector.load %arg8[%c0_17, %c0_18] : memref<1x1024xf32, #tpu.memory_space<vmem>>, vector<1x1024xf32>
    %24 = vector.broadcast %23 : vector<1x1024xf32> to vector<32x1024xf32>
    %25 = arith.addf %22, %24 : vector<32x1024xf32>
    %cst_19 = arith.constant 0.000000e+00 : f32
    %26 = vector.broadcast %cst_19 : f32 to vector<32x1024xf32>
    %27 = arith.maximumf %25, %26 : vector<32x1024xf32>
    %28 = arith.truncf %27 : vector<32x1024xf32> to vector<32x1024xbf16>
    %29 = vector.shape_cast %28 : vector<32x1024xbf16> to vector<2x16x1024xbf16>
    %cst_20 = arith.constant dense<0xFF80> : vector<2x1024xbf16>
    %30 = vector.multi_reduction <maximumf>, %29, %cst_20 [1] : vector<2x16x1024xbf16> to vector<2x1024xbf16>
    %c0_21 = arith.constant 0 : index
    %c0_22 = arith.constant 0 : index
    %31 = vector.load %arg16[%c0_21, %c0_22] : memref<2x1024xbf16, #tpu.memory_space<vmem>>, vector<2x1024xbf16>
    %32 = arith.maximumf %31, %30 : vector<2x1024xbf16>
    %c0_23 = arith.constant 0 : index
    %c0_24 = arith.constant 0 : index
    %33 = vector.load %arg16[%c0_23, %c0_24] : memref<2x1024xbf16, #tpu.memory_space<vmem>>, vector<2x1024xbf16>
    tpu.vector_store %arg16[%c0_23, %c0_24], %32 {strides = array<i32>} : memref<2x1024xbf16, #tpu.memory_space<vmem>>, vector<2x1024xbf16>,
    %c0_i32_25 = arith.constant 0 : i32
    %34 = arith.cmpi eq, %arg1, %c0_i32_25 : i32
    %35 = arith.extui %34 : i1 to i32
    %c0_i32_26 = arith.constant 0 : i32
    %36 = arith.cmpi ne, %35, %c0_i32_26 : i32
    scf.if %36 {
      %c0_27 = arith.constant 0 : index
      %c0_28 = arith.constant 0 : index
      %37 = vector.load %arg16[%c0_27, %c0_28] : memref<2x1024xbf16, #tpu.memory_space<vmem>>, vector<2x1024xbf16>
      %c0_29 = arith.constant 0 : index
      %c0_30 = arith.constant 0 : index
      %38 = vector.load %arg9[%c0_29, %c0_30] : memref<1024x512xbf16, #tpu.memory_space<vmem>>, vector<1024x512xbf16>
      %cst_31 = arith.constant dense<0.000000e+00> : vector<2x512xf32>
      %39 = tpu.matmul %37, %38, %cst_31 {dimension_numbers = #tpu.dot_dimension_numbers<[1], [0], [0], [1], [0, 0, 1, 1], [], []>} : vector<2x1024xbf16>, vector<1024x512xbf16>, vector<2x512xf32> -> vector<2x512xf32>
      %c0_32 = arith.constant 0 : index
      %c0_33 = arith.constant 0 : index
      %40 = vector.load %arg10[%c0_32, %c0_33] : memref<1x512xf32, #tpu.memory_space<vmem>>, vector<1x512xf32>
      %41 = vector.broadcast %40 : vector<1x512xf32> to vector<2x512xf32>
      %42 = arith.addf %39, %41 : vector<2x512xf32>
      %cst_34 = arith.constant 0.000000e+00 : f32
      %43 = vector.broadcast %cst_34 : f32 to vector<2x512xf32>
      %44 = arith.maximumf %42, %43 : vector<2x512xf32>
      %45 = arith.truncf %44 : vector<2x512xf32> to vector<2x512xbf16>
      %c0_35 = arith.constant 0 : index
      %c0_36 = arith.constant 0 : index
      %46 = vector.load %arg11[%c0_35, %c0_36] : memref<512x256xbf16, #tpu.memory_space<vmem>>, vector<512x256xbf16>
      %cst_37 = arith.constant dense<0.000000e+00> : vector<2x256xf32>
      %47 = tpu.matmul %45, %46, %cst_37 {dimension_numbers = #tpu.dot_dimension_numbers<[1], [0], [0], [1], [0, 0, 1, 1], [], []>} : vector<2x512xbf16>, vector<512x256xbf16>, vector<2x256xf32> -> vector<2x256xf32>
      %c0_38 = arith.constant 0 : index
      %c0_39 = arith.constant 0 : index
      %48 = vector.load %arg12[%c0_38, %c0_39] : memref<1x256xf32, #tpu.memory_space<vmem>>, vector<1x256xf32>
      %49 = vector.broadcast %48 : vector<1x256xf32> to vector<2x256xf32>
      %50 = arith.addf %47, %49 : vector<2x256xf32>
      %cst_40 = arith.constant 0.000000e+00 : f32
      %51 = vector.broadcast %cst_40 : f32 to vector<2x256xf32>
      %52 = arith.maximumf %50, %51 : vector<2x256xf32>
      %53 = arith.truncf %52 : vector<2x256xf32> to vector<2x256xbf16>
      %c0_41 = arith.constant 0 : index
      %c0_42 = arith.constant 0 : index
      %54 = vector.load %arg13[%c0_41, %c0_42] : memref<256x16xbf16, #tpu.memory_space<vmem>>, vector<256x16xbf16>
      %cst_43 = arith.constant dense<0.000000e+00> : vector<2x16xf32>
      %55 = tpu.matmul %53, %54, %cst_43 {dimension_numbers = #tpu.dot_dimension_numbers<[1], [0], [0], [1], [0, 0, 1, 1], [], []>} : vector<2x256xbf16>, vector<256x16xbf16>, vector<2x16xf32> -> vector<2x16xf32>
      %c0_44 = arith.constant 0 : index
      %c0_45 = arith.constant 0 : index
      %56 = vector.load %arg14[%c0_44, %c0_45] : memref<1x16xf32, #tpu.memory_space<vmem>>, vector<1x16xf32>
      %57 = vector.broadcast %56 : vector<1x16xf32> to vector<2x16xf32>
      %58 = arith.addf %55, %57 : vector<2x16xf32>
      %c0_46 = arith.constant 0 : index
      %c0_47 = arith.constant 0 : index
      %59 = vector.load %arg15[%c0_46, %c0_47] : memref<2x16xf32, #tpu.memory_space<vmem>>, vector<2x16xf32>
      tpu.vector_store %arg15[%c0_46, %c0_47], %58 {strides = array<i32>} : memref<2x16xf32, #tpu.memory_space<vmem>>, vector<2x16xf32>,
    } else {
    }
    return
  }
  func.func @transform_0(%arg0: i32, %arg1: i32) -> (i32, i32, i32) {
    %c0_i32 = arith.constant 0 : i32
    %c0_i32_0 = arith.constant 0 : i32
    return %arg0, %arg1, %c0_i32 : i32, i32, i32
  }
  func.func @transform_1(%arg0: i32, %arg1: i32) -> (i32, i32) {
    %c0_i32 = arith.constant 0 : i32
    %c0_i32_0 = arith.constant 0 : i32
    %c0_i32_1 = arith.constant 0 : i32
    return %c0_i32, %c0_i32_0 : i32, i32
  }
  func.func @transform_2(%arg0: i32, %arg1: i32) -> (i32, i32) {
    %c0_i32 = arith.constant 0 : i32
    %c0_i32_0 = arith.constant 0 : i32
    %c0_i32_1 = arith.constant 0 : i32
    return %c0_i32, %c0_i32_0 : i32, i32
  }
  func.func @transform_3(%arg0: i32, %arg1: i32) -> (i32, i32) {
    %c0_i32 = arith.constant 0 : i32
    %c0_i32_0 = arith.constant 0 : i32
    %c0_i32_1 = arith.constant 0 : i32
    return %c0_i32, %c0_i32_0 : i32, i32
  }
  func.func @transform_4(%arg0: i32, %arg1: i32) -> (i32, i32) {
    %c0_i32 = arith.constant 0 : i32
    %c0_i32_0 = arith.constant 0 : i32
    %c0_i32_1 = arith.constant 0 : i32
    return %c0_i32, %c0_i32_0 : i32, i32
  }
  func.func @transform_5(%arg0: i32, %arg1: i32) -> (i32, i32) {
    %c0_i32 = arith.constant 0 : i32
    %c0_i32_0 = arith.constant 0 : i32
    %c0_i32_1 = arith.constant 0 : i32
    return %c0_i32, %c0_i32_0 : i32, i32
  }
  func.func @transform_6(%arg0: i32, %arg1: i32) -> (i32, i32) {
    %c0_i32 = arith.constant 0 : i32
    %c0_i32_0 = arith.constant 0 : i32
    %c0_i32_1 = arith.constant 0 : i32
    return %c0_i32, %c0_i32_0 : i32, i32
  }
  func.func @transform_7(%arg0: i32, %arg1: i32) -> (i32, i32) {
    %c0_i32 = arith.constant 0 : i32
    %c0_i32_0 = arith.constant 0 : i32
    %c0_i32_1 = arith.constant 0 : i32
    return %c0_i32, %c0_i32_0 : i32, i32
  }
  func.func @transform_8(%arg0: i32, %arg1: i32) -> (i32, i32) {
    %c0_i32 = arith.constant 0 : i32
    %c0_i32_0 = arith.constant 0 : i32
    %c0_i32_1 = arith.constant 0 : i32
    return %c0_i32, %c0_i32_0 : i32, i32
  }
  func.func @transform_9(%arg0: i32, %arg1: i32) -> (i32, i32) {
    %c0_i32 = arith.constant 0 : i32
    %c0_i32_0 = arith.constant 0 : i32
    %c0_i32_1 = arith.constant 0 : i32
    return %c0_i32, %c0_i32_0 : i32, i32
  }
  func.func @transform_10(%arg0: i32, %arg1: i32) -> (i32, i32) {
    %c0_i32 = arith.constant 0 : i32
    %c0_i32_0 = arith.constant 0 : i32
    %c0_i32_1 = arith.constant 0 : i32
    return %c0_i32, %c0_i32_0 : i32, i32
  }
  func.func @transform_11(%arg0: i32, %arg1: i32) -> (i32, i32) {
    %c0_i32 = arith.constant 0 : i32
    %c0_i32_0 = arith.constant 0 : i32
    %c0_i32_1 = arith.constant 0 : i32
    return %c0_i32, %c0_i32_0 : i32, i32
  }
  func.func @transform_12(%arg0: i32, %arg1: i32) -> (i32, i32) {
    %c0_i32 = arith.constant 0 : i32
    %c0_i32_0 = arith.constant 0 : i32
    %c0_i32_1 = arith.constant 0 : i32
    return %c0_i32, %c0_i32_0 : i32, i32
  }
  func.func @transform_13(%arg0: i32, %arg1: i32) -> (i32, i32) {
    %c0_i32 = arith.constant 0 : i32
    %c0_i32_0 = arith.constant 0 : i32
    return %arg0, %c0_i32 : i32, i32
  }
}

</mosaic_0001>

<bundles_post_ra>
// kernel: tpu_custom_call.1
= control target key start
LH: loop header
LB: loop body
LE: loop exit
PB: predicated region body
PF: predicated region fallthrough
CT: control target
= control target key end

     0   :  { %18 = vsyncpa [#allocation4], 0  ;;  %s5556_s0 = inlined_call_operand.vmem [shape: bf16[2,16,4], index: 0, kind: input, shape index: {}]   ;;  %s5557_s1 = inlined_call_operand.vmem [shape: bf16[4,64], index: 1, kind: input, shape index: {}]   ;;  %s5558_s2 = inlined_call_operand.vmem [shape: f32[1,64], index: 2, kind: input, shape index: {}]   ;;  %s5559_s3 = inlined_call_operand.vmem [shape: bf16[64,128], index: 3, kind: input, shape index: {}]   ;;  %s5560_s4 = inlined_call_operand.vmem [shape: f32[1,128], index: 4, kind: input, shape index: {}]   ;;  %s5561_s5 = inlined_call_operand.hbm [shape: bf16[128,1024], index: 5, kind: input, shape index: {}]   ;;  %s5562_s6 = inlined_call_operand.vmem [shape: f32[1,1024], index: 6, kind: input, shape index: {}]   ;;  %s5563_s7 = inlined_call_operand.hbm [shape: bf16[1024,512], index: 7, kind: input, shape index: {}]   ;;  %s5564_s8 = inlined_call_operand.vmem [shape: f32[1,512], index: 8, kind: input, shape index: {}]   ;;  %s5565_s9 = inlined_call_operand.hbm [shape: bf16[512,256], index: 9, kind: input, shape index: {}]   ;;  %s5566_s10 = inlined_call_operand.vmem [shape: f32[1,256], index: 10, kind: input, shape index: {}]   ;;  %s5567_s11 = inlined_call_operand.vmem [shape: bf16[256,16], index: 11, kind: input, shape index: {}]   ;;  %s5568_s12 = inlined_call_operand.vmem [shape: f32[1,16], index: 12, kind: input, shape index: {}]   ;;  %s5569_s13 = inlined_call_operand.hbm [shape: f32[2,16], index: 13, kind: output, shape index: {}]  }
   0x1   :  { %19 = vsyncpa [#allocation7], 0 }
   0x2   :  { %20 = vsyncpa [#allocation5], 0  ;;  %s5156_s25 = smov [#allocation6]   ;;  %s5062_s29 = scalar_lea.hbm %s5563_s7, 32768 }
   0x3   :  { %s50_s26 = sshll.u32 %s5156_s25, 4  ;;  %p5063_p0 = scmp.ne.s32.totalorder %s5563_s7, %s5062_s29  ;;  %s51_s26 = int_to_ptr.vmem [resolvable:$true] %s50_s26 }
   0x4   :  { %p5066_p1 = scmp.lt.u32.totalorder %s5062_s29, %s5563_s7 }
   0x6   :  { %p5068_p2 = pnand %p5066_p1, %p5063_p0 }
   0x8   :  { %5071 = shalt.err (!%p5068_p2)
}
   0x9   :  { %s5072_s17 = scalar_lea.vmem %s51_s26, 32768  ;;  %p5077_p4 = scmp.lt.s32.totalorder %s51_s26, %s51_s26 }
   0xa   :  { %p5073_p3 = scmp.ne.s32.totalorder %s51_s26, %s5072_s17  ;;  %p5078_p5 = scmp.lt.s32.totalorder %s5072_s17, %s5072_s17 }
   0xc   :  { %p5079_p6 = por %p5078_p5, %p5077_p4 }
   0xe   :  { %p5080_p7 = pnand %p5079_p6, %p5073_p3 }
  0x10   :  { %5083 = shalt.err (!%p5080_p7)
}
  0x11   :  { %s5157_s18 = smov 256   ;;  %s5158_s19 = smov 16  }
  0x12   :  { %56 = dma.hbm_to_vmem [thread:$0]  %s5563_s7, 32768, %s51_s26, [#allocation7], %s5157_s18, %s5157_s18, %s5158_s19  }
  0x13   :  { %s5159_s22 = smov [#allocation3]   ;;  %s5084_s27 = scalar_lea.hbm %s5561_s5, 8192 }
  0x14   :  { %s36_s23 = sshll.u32 %s5159_s22, 4  ;;  %p5085_p8 = scmp.ne.s32.totalorder %s5561_s5, %s5084_s27  ;;  %s37_s23 = int_to_ptr.vmem [resolvable:$true] %s36_s23 }
  0x15   :  { %p5088_p9 = scmp.lt.u32.totalorder %s5084_s27, %s5561_s5 }
  0x17   :  { %p5090_p10 = pnand %p5088_p9, %p5085_p8 }
  0x19   :  { %5093 = shalt.err (!%p5090_p10)
}
  0x1a   :  { %s5094_s15 = scalar_lea.vmem %s37_s23, 8192  ;;  %p5099_p12 = scmp.lt.s32.totalorder %s37_s23, %s37_s23 }
  0x1b   :  { %p5095_p11 = scmp.ne.s32.totalorder %s37_s23, %s5094_s15  ;;  %p5100_p13 = scmp.lt.s32.totalorder %s5094_s15, %s5094_s15 }
  0x1d   :  { %p5101_p0 = por %p5100_p13, %p5099_p12 }
  0x1f   :  { %p5102_p1 = pnand %p5101_p0, %p5095_p11 }
  0x21   :  { %5105 = shalt.err (!%p5102_p1)
}
  0x22   :  { %s5160_s7 = smov 512   ;;  %s5161_s26 = smov 32  }
  0x23   :  { %42 = dma.hbm_to_vmem [thread:$0]  %s5561_s5, 8192, %s37_s23, [#allocation4], %s5160_s7, %s5160_s7, %s5161_s26  }
  0x24   :  { %s5162_s18 = smov [#allocation8]   ;;  %s5106_s22 = scalar_lea.hbm %s5565_s9, 8192 }
  0x25   :  { %s64_s19 = sshll.u32 %s5162_s18, 4  ;;  %p5107_p2 = scmp.ne.s32.totalorder %s5565_s9, %s5106_s22  ;;  %s65_s19 = int_to_ptr.vmem [resolvable:$true] %s64_s19 }
  0x26   :  { %p5110_p3 = scmp.lt.u32.totalorder %s5106_s22, %s5565_s9 }
  0x28   :  { %p5112_p4 = pnand %p5110_p3, %p5107_p2 }
  0x2a   :  { %5115 = shalt.err (!%p5112_p4)
}
  0x2b   :  { %s5116_s29 = scalar_lea.vmem %s65_s19, 8192  ;;  %p5121_p6 = scmp.lt.s32.totalorder %s65_s19, %s65_s19 }
  0x2c   :  { %p5117_p5 = scmp.ne.s32.totalorder %s65_s19, %s5116_s29  ;;  %p5122_p7 = scmp.lt.s32.totalorder %s5116_s29, %s5116_s29 }
  0x2e   :  { %p5123_p8 = por %p5122_p7, %p5121_p6 }
  0x30   :  { %p5124_p9 = pnand %p5123_p8, %p5117_p5 }
  0x32   :  { %5127 = shalt.err (!%p5124_p9)
}
  0x33   :  { %s5163_s5 = smov 128   ;;  %s5164_s23 = smov 8  }
  0x34   :  { %70 = dma.hbm_to_vmem [thread:$0]  %s5565_s9, 8192, %s65_s19, [#allocation7], %s5163_s5, %s5163_s5, %s5164_s23  }
  0x35   :  { %5150 = dma.done.wait [#allocation4], 8192  }
  0x36   :  { %5151 = vsyncadd [#allocation4], 4294959104 }
  0x37   :  { %5152 = dma.done.wait [#allocation7], 40960  }
  0x38   :  { %5153 = vsyncadd [#allocation7], 4294926336  ;;  %vm121_vm0 = vcmask 1041408   ;;  %vm114_vm1 = vcmask 31744   ;;  %v96_v0 = vld [vmem:[%s5557_s1] sm:$0x3] }
  0x39   :  { %4546 = vmatprep.subr.msk.bf16.mxu1 %vm121_vm0, %v96_v0  ;;  %v123_v1 = vsel %vm121_vm0, %v96_v0, 0  ;;  %v4560_v2 = vld [vmem:[%s5556_s0] sm:$0xff]   ;;  %v4561_v3 = vld [vmem:[%s5556_s0 + $0x8] sm:$0xff]   ;;  %v4564_v6 = vld [vmem:[%s5559_s3 + $0x10] sm:$0xff]   ;;  %vm219_vm2 = vcmask 523264   ;;  %vm1349_vm3 = vcmask 1041409  }
  0x3a   :  { %4495 = vmatpush3.bf16.msra.mxu1 %v123_v1  ;;  %4496 = vmatprep.mubr.msk.bf16.mxu1 %vm114_vm1, %v4560_v2  ;;  %v4562_v4 = vld [vmem:[%s5559_s3] sm:$0xff]   ;;  %v4563_v5 = vld [vmem:[%s5559_s3 + $0x8] sm:$0xff]   ;;  %v4565_v7 = vld [vmem:[%s5559_s3 + $0x18] sm:$0xff]   ;;  %vm4030_vm4 = vcmask 123904  }
  0x3b   :  { %4500 = vmatprep.subr.bf16.mxu1 %v4562_v4  ;;  %v5296_v8 = vld [vmem:[#allocation3] sm:$0xff]  ;;  %v283_v12 = vld [vmem:[#allocation3 + $0x10] sm:$0xff] }
  0x3c   :  { %v5298_v9 = vld [vmem:[#allocation3 + $0x20] sm:$0xff]  ;;  %v287_v13 = vld [vmem:[#allocation3 + $0x30] sm:$0xff] }
  0x3d   :  { %4497 = vmatmul.mubr.msk.bf16.vlgmr.msra.gmra.mrb[0].mxu1 %vm114_vm1, %v4561_v3  ;;  %v4060_v10 = vcombine.low %v5296_v8, %v5298_v9  ;;  %v4061_v11 = vcombine.high %v5296_v8, %v5298_v9  ;;  %v4065_v14 = vcombine.high %v283_v12, %v287_v13  ;;  %v4064_v15 = vcombine.low %v283_v12, %v287_v13  ;;  %v291_v16 = vld [vmem:[#allocation3 + $0x50] sm:$0xff]  ;;  %v4048_v36 = vld [vmem:[%s5558_s2] ss:$0 sm:$0xff] }
  0x3e   :  { %4501 = vmatpush3.bf16.msra.mxu1 %v4562_v4  ;;  %v295_v17 = vld [vmem:[#allocation3 + $0x70] sm:$0xff]  ;;  %v289_v49 = vld [vmem:[#allocation3 + $0x40] sm:$0xff] }
  0x3f   :  { %4502 = vmatprep.subr.bf16.mxu1 %v4563_v5  ;;  %813 = vmatprep.subr.bf16.mxu0 %v4065_v14  ;;  %v4073_v18 = vcombine.high %v291_v16, %v295_v17  ;;  %v4072_v19 = vcombine.low %v291_v16, %v295_v17  ;;  %v299_v20 = vld [vmem:[#allocation3 + $0x90] sm:$0xff]  ;;  %v293_v50 = vld [vmem:[#allocation3 + $0x60] sm:$0xff] }
  0x40   :  { %814 = vmatpush1.bf16.msra.mxu0 %v4064_v15  ;;  %v303_v21 = vld [vmem:[#allocation3 + $0xb0] sm:$0xff]  ;;  %v4069_v53 = vcombine.high %v289_v49, %v293_v50  ;;  %v297_v54 = vld [vmem:[#allocation3 + $0x80] sm:$0xff]  ;;  %v4068_v56 = vcombine.low %v289_v49, %v293_v50  ;;  %v306_v50 = vld [vmem:[#allocation3 + $0xc8] sm:$0xff] }
  0x41   :  { %815 = vmatprep.subr.bf16.mxu0 %v4073_v18  ;;  %v4081_v22 = vcombine.high %v299_v20, %v303_v21  ;;  %v4080_v23 = vcombine.low %v299_v20, %v303_v21  ;;  %v307_v24 = vld [vmem:[#allocation3 + $0xd0] sm:$0xff]  ;;  %v301_v55 = vld [vmem:[#allocation3 + $0xa0] sm:$0xff] }
  0x42   :  { %4503 = vmatpush3.bf16.msra.mxu1 %v4563_v5  ;;  %v311_v25 = vld [vmem:[#allocation3 + $0xf0] sm:$0xff]  ;;  %v4077_v57 = vcombine.high %v297_v54, %v301_v55  ;;  %v305_v58 = vld [vmem:[#allocation3 + $0xc0] sm:$0xff]  ;;  %v4076_v60 = vcombine.low %v297_v54, %v301_v55  ;;  %v314_v54 = vld [vmem:[#allocation3 + $0x108] sm:$0xff] }
  0x43   :  { %4504 = vmatprep.subr.bf16.mxu1 %v4564_v6  ;;  %v4089_v26 = vcombine.high %v307_v24, %v311_v25  ;;  %v4088_v27 = vcombine.low %v307_v24, %v311_v25  ;;  %v315_v28 = vld [vmem:[#allocation3 + $0x110] sm:$0xff]  ;;  %v309_v59 = vld [vmem:[#allocation3 + $0xe0] sm:$0xff]  ;;  %v286_v24 = vld [vmem:[#allocation3 + $0x28] sm:$0xff] }
  0x44   :  { %816 = vmatpush1.bf16.msra.mxu0 %v4072_v19  ;;  %v319_v29 = vld [vmem:[#allocation3 + $0x130] sm:$0xff]  ;;  %v4085_v61 = vcombine.high %v305_v58, %v309_v59  ;;  %v313_v62 = vld [vmem:[#allocation3 + $0x100] sm:$0xff]  ;;  %v4084_v0 = vcombine.low %v305_v58, %v309_v59  ;;  %v318_v55 = vld [vmem:[#allocation3 + $0x128] sm:$0xff] }
  0x45   :  { %817 = vmatprep.subr.bf16.mxu0 %v4081_v22  ;;  %v4097_v30 = vcombine.high %v315_v28, %v319_v29  ;;  %v4096_v31 = vcombine.low %v315_v28, %v319_v29  ;;  %v323_v32 = vld [vmem:[#allocation3 + $0x150] sm:$0xff]  ;;  %v317_v63 = vld [vmem:[#allocation3 + $0x120] sm:$0xff]  ;;  %v322_v58 = vld [vmem:[#allocation3 + $0x148] sm:$0xff] }
  0x46   :  { %4505 = vmatpush3.bf16.msra.mxu1 %v4564_v6  ;;  %v327_v33 = vld [vmem:[#allocation3 + $0x170] sm:$0xff]  ;;  %v4093_v1 = vcombine.high %v313_v62, %v317_v63  ;;  %v321_v2 = vld [vmem:[#allocation3 + $0x140] sm:$0xff]  ;;  %v4092_v4 = vcombine.low %v313_v62, %v317_v63  ;;  %v326_v59 = vld [vmem:[#allocation3 + $0x168] sm:$0xff] }
  0x47   :  { %4506 = vmatprep.subr.bf16.mxu1 %v4565_v7  ;;  %v4105_v34 = vcombine.high %v323_v32, %v327_v33  ;;  %v4104_v35 = vcombine.low %v323_v32, %v327_v33  ;;  %v325_v3 = vld [vmem:[#allocation3 + $0x160] sm:$0xff]  ;;  %v339_v18 = vld [vmem:[#allocation3 + $0x1d0] sm:$0xff]  ;;  %v330_v62 = vld [vmem:[#allocation3 + $0x188] sm:$0xff] }
  0x48   :  { %818 = vmatpush1.bf16.msra.mxu0 %v4080_v23  ;;  %v4101_v5 = vcombine.high %v321_v2, %v325_v3  ;;  %v4100_v6 = vcombine.low %v321_v2, %v325_v3  ;;  %v333_v8 = vld [vmem:[#allocation3 + $0x1a0] sm:$0xff]  ;;  %v343_v19 = vld [vmem:[#allocation3 + $0x1f0] sm:$0xff]  ;;  %v282_v23 = vld [vmem:[#allocation3 + $0x8] sm:$0xff] }
  0x49   :  { %819 = vmatprep.subr.bf16.mxu0 %v4089_v26  ;;  %v337_v15 = vld [vmem:[#allocation3 + $0x1c0] sm:$0xff]  ;;  %v4121_v21 = vcombine.high %v339_v18, %v343_v19  ;;  %v4120_v22 = vcombine.low %v339_v18, %v343_v19  ;;  %v4063_v25 = vcombine.high %v282_v23, %v286_v24  ;;  %v4062_v26 = vcombine.low %v282_v23, %v286_v24  ;;  %v334_v63 = vld [vmem:[#allocation3 + $0x1a8] sm:$0xff]  ;;  %v308_v18 = vld [vmem:[#allocation3 + $0xd8] sm:$0xff] }
  0x4a   :  { %4507 = vmatpush3.bf16.msra.mxu1 %v4565_v7  ;;  %v329_v7 = vld [vmem:[#allocation3 + $0x180] sm:$0xff]  ;;  %v338_v2 = vld [vmem:[#allocation3 + $0x1c8] sm:$0xff]  ;;  %v312_v19 = vld [vmem:[#allocation3 + $0xf8] sm:$0xff] }
  0x4b   :  { %707 = vmatprep.subr.bf16.mxu1 %v4061_v11  ;;  %v4109_v9 = vcombine.high %v329_v7, %v333_v8  ;;  %v335_v11 = vld [vmem:[#allocation3 + $0x1b0] sm:$0xff]  ;;  %v4108_v12 = vcombine.low %v329_v7, %v333_v8  ;;  %v341_v16 = vld [vmem:[#allocation3 + $0x1e0] sm:$0xff]  ;;  %v342_v3 = vld [vmem:[#allocation3 + $0x1e8] sm:$0xff]  ;;  %v4090_v24 = vcombine.low %v308_v18, %v312_v19 }
  0x4c   :  { %820 = vmatpush1.bf16.msra.mxu0 %v4088_v27  ;;  %v4117_v17 = vcombine.high %v337_v15, %v341_v16  ;;  %v4116_v20 = vcombine.low %v337_v15, %v341_v16  ;;  %v5165_v27 = vmov 0   ;;  %v4053_v28 = vld [vmem:[%s5560_s4] ss:$0 sm:$0xff]  ;;  %v288_v7 = vld [vmem:[#allocation3 + $0x38] sm:$0xff]  ;;  %v4118_v8 = vcombine.low %v338_v2, %v342_v3 }
  0x4d   :  { %821 = vmatprep.subr.bf16.mxu0 %v4097_v30  ;;  %845 = vmatprep.mubr.bf16.mxu0 %v5165_v27  ;;  %v304_v15 = vld [vmem:[#allocation3 + $0xb8] sm:$0xff] }
  0x4e   :  { %v320_v23 = vld [vmem:[#allocation3 + $0x138] sm:$0xff] }
  0x50   :  { %822 = vmatpush1.bf16.msra.mxu0 %v4096_v31 }
  0x51   :  { %823 = vmatprep.subr.bf16.mxu0 %v4105_v34 }
  0x54   :  { %824 = vmatpush1.bf16.msra.mxu0 %v4104_v35 }
 0x110   :  { %v4498_v37 = vpop.f32.mrb[0].mxu1 }
 0x111   :  { %v168_v38 = vadd.f32 %v4498_v37, %v4048_v36  ;;  %v159_v39 = vpop.f32.mrb[1].mxu1 }
 0x112   :  { %v160_v40 = vadd.f32 %v4048_v36, %v159_v39  ;;  %v4499_v41 = vpop.f32.mrb[2].mxu1  ;;  %v290_v39 = vld [vmem:[#allocation3 + $0x48] sm:$0xff] }
 0x113   :  { %v171_v42 = vadd.f32 %v4499_v41, %v4048_v36  ;;  %v162_v43 = vpop.f32.mrb[3].mxu1  ;;  %v176_v45 = vmax.f32 %v168_v38, 0.0 }
 0x114   :  { %v163_v44 = vadd.f32 %v4048_v36, %v162_v43  ;;  %v174_v47 = vmax.f32 %v160_v40, 0.0  ;;  %v294_v40 = vld [vmem:[#allocation3 + $0x68] sm:$0xff] }
 0x115   :  { %v177_v46 = vmax.f32 %v171_v42, 0.0 }
 0x116   :  { %v175_v48 = vmax.f32 %v163_v44, 0.0 }
 0x117   :  { %v179_v51 = vpack.c.bf16 %v177_v46, %v176_v45  ;;  %v4071_v45 = vcombine.high %v290_v39, %v294_v40  ;;  %v298_v46 = vld [vmem:[#allocation3 + $0x88] sm:$0xff] }
 0x118   :  { %v178_v52 = vpack.c.bf16 %v175_v48, %v174_v47  ;;  %v302_v47 = vld [vmem:[#allocation3 + $0xa8] sm:$0xff]  ;;  %v4070_v48 = vcombine.low %v290_v39, %v294_v40  ;;  %v4568_v40 = vld [vmem:[#allocation6 + $0x4] ss:$16 sps:$4 sm:$0xff]  }
 0x119   :  { %v4079_v49 = vcombine.high %v298_v46, %v302_v47 }
 0x11a   :  { %4508 = vmatprep.mubr.msk.bf16.mxu1 %vm219_vm2, %v178_v52  ;;  %v4078_v52 = vcombine.low %v298_v46, %v302_v47  ;;  %v4574_v46 = vld [vmem:[#allocation6 + $0x24] ss:$16 sps:$4 sm:$0xff]   ;;  %v4577_v47 = vld [vmem:[#allocation6 + $0x2c] ss:$16 sps:$4 sm:$0xff]  }
 0x11b   :  { %4509 = vmatmul.mubr.msk.bf16.vlgmr.msra.gmra.mrb[4].mxu1 %vm219_vm2, %v179_v51  ;;  %v310_v51 = vld [vmem:[#allocation3 + $0xe8] sm:$0xff] }
 0x11c   :  { %708 = vmatpush1.bf16.msra.mxu1 %v4060_v10  ;;  %v331_v10 = vld [vmem:[#allocation3 + $0x190] sm:$0xff]  ;;  %739 = vmatprep.mubr.bf16.mxu1 %v5165_v27 }
 0x11d   :  { %709 = vmatprep.subr.bf16.mxu1 %v4069_v53  ;;  %v4113_v13 = vcombine.high %v331_v10, %v335_v11  ;;  %v4112_v14 = vcombine.low %v331_v10, %v335_v11  ;;  %v4087_v53 = vcombine.high %v306_v50, %v310_v51  ;;  %v292_v10 = vld [vmem:[#allocation3 + $0x58] sm:$0xff] }
 0x11e   :  { %v296_v11 = vld [vmem:[#allocation3 + $0x78] sm:$0xff] }
 0x11f   :  { %825 = vmatprep.subr.bf16.mxu0 %v4113_v13  ;;  %v4075_v13 = vcombine.high %v292_v10, %v296_v11  ;;  %v4074_v16 = vcombine.low %v292_v10, %v296_v11  ;;  %v4617_v10 = vld [vmem:[#allocation6 + $0x108] ss:$16 sps:$4 sm:$0xff]   ;;  %v347_v11 = vlaneseq }
 0x120   :  { %710 = vmatpush1.bf16.msra.mxu1 %v4068_v56  ;;  %826 = vmatpush1.bf16.msra.mxu0 %v4112_v14  ;;  %v4086_v56 = vcombine.low %v306_v50, %v310_v51  ;;  %v300_v14 = vld [vmem:[#allocation3 + $0x98] sm:$0xff]  ;;  %v4578_v51 = vld [vmem:[#allocation6 + $0x40] ss:$16 sps:$4 sm:$0xff]  }
 0x121   :  { %711 = vmatprep.subr.bf16.mxu1 %v4077_v57  ;;  %827 = vmatprep.subr.bf16.mxu0 %v4121_v21  ;;  %v4095_v57 = vcombine.high %v314_v54, %v318_v55  ;;  %v4091_v21 = vcombine.high %v308_v18, %v312_v19  ;;  %v4583_v50 = vld [vmem:[#allocation6 + $0x4c] ss:$16 sps:$4 sm:$0xff]   ;;  %v4628_v18 = vld [vmem:[#allocation6 + $0x144] ss:$16 sps:$4 sm:$0xff]  }
 0x122   :  { %v4631_v19 = vld [vmem:[#allocation6 + $0x14c] ss:$16 sps:$4 sm:$0xff]  }
 0x124   :  { %712 = vmatpush1.bf16.msra.mxu1 %v4076_v60  ;;  %828 = vmatpush1.bf16.msra.mxu0 %v4120_v22  ;;  %v4094_v60 = vcombine.low %v314_v54, %v318_v55  ;;  %v316_v22 = vld [vmem:[#allocation3 + $0x118] sm:$0xff]  ;;  %v4584_v54 = vld [vmem:[#allocation6 + $0x60] ss:$16 sps:$4 sm:$0xff]  }
 0x125   :  { %713 = vmatprep.subr.bf16.mxu1 %v4085_v61  ;;  %v4103_v61 = vcombine.high %v322_v58, %v326_v59  ;;  %3037 = vmatprep.subr.bf16.mxu0 %v4568_v40  ;;  %v4587_v55 = vld [vmem:[#allocation6 + $0x68] ss:$16 sps:$4 sm:$0xff]   ;;  %v4638_v40 = vld [vmem:[#allocation6 + $0x180] ss:$16 sps:$4 sm:$0xff]  }
 0x128   :  { %714 = vmatpush1.bf16.msra.mxu1 %v4084_v0  ;;  %v4102_v0 = vcombine.low %v322_v58, %v326_v59  ;;  %v4590_v58 = vld [vmem:[#allocation6 + $0x80] ss:$16 sps:$4 sm:$0xff]   ;;  %v4593_v59 = vld [vmem:[#allocation6 + $0x88] ss:$16 sps:$4 sm:$0xff]  }
 0x129   :  { %715 = vmatprep.subr.bf16.mxu1 %v4093_v1  ;;  %v4111_v1 = vcombine.high %v330_v62, %v334_v63 }
 0x12c   :  { %716 = vmatpush1.bf16.msra.mxu1 %v4092_v4  ;;  %v4110_v4 = vcombine.low %v330_v62, %v334_v63  ;;  %v4596_v62 = vld [vmem:[#allocation6 + $0xa0] ss:$16 sps:$4 sm:$0xff]   ;;  %v4599_v63 = vld [vmem:[#allocation6 + $0xa8] ss:$16 sps:$4 sm:$0xff]  }
 0x12d   :  { %717 = vmatprep.subr.bf16.mxu1 %v4101_v5  ;;  %v4119_v5 = vcombine.high %v338_v2, %v342_v3  ;;  %v4602_v2 = vld [vmem:[#allocation6 + $0xc0] ss:$16 sps:$4 sm:$0xff]   ;;  %v4605_v3 = vld [vmem:[#allocation6 + $0xc8] ss:$16 sps:$4 sm:$0xff]  }
 0x130   :  { %718 = vmatpush1.bf16.msra.mxu1 %v4100_v6  ;;  %v284_v6 = vld [vmem:[#allocation3 + $0x18] sm:$0xff] }
 0x131   :  { %719 = vmatprep.subr.bf16.mxu1 %v4109_v9  ;;  %v4067_v9 = vcombine.high %v284_v6, %v288_v7 }
 0x134   :  { %720 = vmatpush1.bf16.msra.mxu1 %v4108_v12  ;;  %v4066_v12 = vcombine.low %v284_v6, %v288_v7  ;;  %v4608_v6 = vld [vmem:[#allocation6 + $0xe0] ss:$16 sps:$4 sm:$0xff]   ;;  %v4611_v7 = vld [vmem:[#allocation6 + $0xe8] ss:$16 sps:$4 sm:$0xff]  }
 0x135   :  { %721 = vmatprep.subr.bf16.mxu1 %v4117_v17  ;;  %v4083_v17 = vcombine.high %v300_v14, %v304_v15 }
 0x138   :  { %722 = vmatpush1.bf16.msra.mxu1 %v4116_v20  ;;  %v4082_v20 = vcombine.low %v300_v14, %v304_v15  ;;  %v4625_v14 = vld [vmem:[#allocation6 + $0x12c] ss:$16 sps:$4 sm:$0xff]   ;;  %v4620_v15 = vld [vmem:[#allocation6 + $0x120] ss:$16 sps:$4 sm:$0xff]  }
 0x139   :  { %760 = vmatprep.subr.bf16.mxu1 %v4063_v25  ;;  %v4099_v25 = vcombine.high %v316_v22, %v320_v23 }
 0x1ee   :  { %v4510_v29 = vpop.f32.mrb[4].mxu1 }
 0x1ef   :  { %v269_v30 = vadd.f32 %v4510_v29, %v4053_v28  ;;  %v260_v31 = vpop.f32.mrb[5].mxu1  ;;  %v4098_v29 = vcombine.low %v316_v22, %v320_v23 }
 0x1f0   :  { %v261_v32 = vadd.f32 %v4053_v28, %v260_v31  ;;  %v4511_v33 = vpop.f32.mrb[6].mxu1  ;;  %v332_v31 = vld [vmem:[#allocation3 + $0x198] sm:$0xff] }
 0x1f1   :  { %v272_v34 = vadd.f32 %v4511_v33, %v4053_v28  ;;  %v263_v35 = vpop.f32.mrb[7].mxu1  ;;  %v277_v37 = vmax.f32 %v269_v30, 0.0 }
 0x1f2   :  { %v264_v36 = vadd.f32 %v4053_v28, %v263_v35  ;;  %v275_v41 = vmax.f32 %v261_v32, 0.0  ;;  %v328_v28 = vld [vmem:[#allocation3 + $0x178] sm:$0xff] }
 0x1f3   :  { %v278_v38 = vmax.f32 %v272_v34, 0.0  ;;  %v336_v32 = vld [vmem:[#allocation3 + $0x1b8] sm:$0xff] }
 0x1f4   :  { %v276_v42 = vmax.f32 %v264_v36, 0.0  ;;  %v4115_v34 = vcombine.high %v332_v31, %v336_v32  ;;  %v340_v35 = vld [vmem:[#allocation3 + $0x1d8] sm:$0xff] }
 0x1f5   :  { %v5312_v43 = vpack.c.bf16 %v278_v38, %v277_v37  ;;  %v344_v36 = vld [vmem:[#allocation3 + $0x1f8] sm:$0xff]  ;;  %v4114_v37 = vcombine.low %v332_v31, %v336_v32 }
 0x1f6   :  { %v5314_v44 = vpack.c.bf16 %v276_v42, %v275_v41  ;;  %v4123_v38 = vcombine.high %v340_v35, %v344_v36  ;;  %v4122_v39 = vcombine.low %v340_v35, %v344_v36  ;;  %v4571_v41 = vld [vmem:[#allocation6 + $0xc] ss:$16 sps:$4 sm:$0xff]   ;;  %v4566_v42 = vld [vmem:[#allocation6] ss:$16 sps:$4 sm:$0xff]   ;;  %v4635_v31 = vld [vmem:[#allocation6 + $0x168] ss:$16 sps:$4 sm:$0xff]  }
 0x1f7   :  { %v4643_v35 = vld [vmem:[#allocation6 + $0x18c] ss:$16 sps:$4 sm:$0xff]  }
 0x1f8   :  { %740 = vmatmul.mubr.bf16.vlgmr.msra.gmra.mrb[8].mxu1 %v5314_v44  ;;  %846 = vmatmul.mubr.bf16.vlgmr.msra.gmra.mrb[0].mxu0 %v5314_v44 }
 0x1f9   :  { %761 = vmatpush1.bf16.msra.mxu1 %v4062_v26  ;;  %749 = vmatprep.mubr.bf16.mxu1 %v5165_v27  ;;  %v324_v26 = vld [vmem:[#allocation3 + $0x158] sm:$0xff] }
 0x1fa   :  { %762 = vmatprep.subr.bf16.mxu1 %v4071_v45  ;;  %855 = vmatprep.mubr.bf16.mxu0 %v5165_v27  ;;  %v4107_v30 = vcombine.high %v324_v26, %v328_v28  ;;  %v4106_v33 = vcombine.low %v324_v26, %v328_v28  ;;  %v4569_v45 = vld [vmem:[#allocation6 + $0x8] ss:$16 sps:$4 sm:$0xff]   ;;  %v5339_v26 = vld [vmem:[%s5562_s6] sm:$0xff] }
 0x1fb   :  { %3038 = vmatpush1.bf16.msra.mxu0 %v4566_v42 }
 0x1fc   :  { %3039 = vmatprep.subr.bf16.mxu0 %v4574_v46 }
 0x1fd   :  { %763 = vmatpush1.bf16.msra.mxu1 %v4070_v48  ;;  %v4572_v48 = vld [vmem:[#allocation6 + $0x20] ss:$16 sps:$4 sm:$0xff]  }
 0x1fe   :  { %764 = vmatprep.subr.bf16.mxu1 %v4079_v49  ;;  %v4575_v49 = vld [vmem:[#allocation6 + $0x28] ss:$16 sps:$4 sm:$0xff]  }
 0x1ff   :  { %3040 = vmatpush1.bf16.msra.mxu0 %v4572_v48  ;;  %v4646_v48 = vld [vmem:[#allocation6 + $0x1a4] ss:$16 sps:$4 sm:$0xff]  }
 0x200   :  { %750 = vmatmul.mubr.bf16.gmra.mrb[12].mxu1 %v5312_v43  ;;  %856 = vmatmul.mubr.bf16.gmra.mrb[4].mxu0 %v5312_v43 }
 0x201   :  { %765 = vmatpush1.bf16.msra.mxu1 %v4078_v52  ;;  %792 = vmatprep.mubr.bf16.mxu1 %v5165_v27  ;;  %v4586_v52 = vld [vmem:[#allocation6 + $0x64] ss:$16 sps:$4 sm:$0xff]  }
 0x202   :  { %766 = vmatprep.subr.bf16.mxu1 %v4087_v53  ;;  %v4589_v53 = vld [vmem:[#allocation6 + $0x6c] ss:$16 sps:$4 sm:$0xff]  }
 0x205   :  { %767 = vmatpush1.bf16.msra.mxu1 %v4086_v56  ;;  %v4592_v56 = vld [vmem:[#allocation6 + $0x84] ss:$16 sps:$4 sm:$0xff]  }
 0x206   :  { %768 = vmatprep.subr.bf16.mxu1 %v4095_v57  ;;  %v4595_v57 = vld [vmem:[#allocation6 + $0x8c] ss:$16 sps:$4 sm:$0xff]  }
 0x209   :  { %769 = vmatpush1.bf16.msra.mxu1 %v4094_v60  ;;  %v4598_v60 = vld [vmem:[#allocation6 + $0xa4] ss:$16 sps:$4 sm:$0xff]  }
 0x20a   :  { %770 = vmatprep.subr.bf16.mxu1 %v4103_v61  ;;  %v4601_v61 = vld [vmem:[#allocation6 + $0xac] ss:$16 sps:$4 sm:$0xff]  }
 0x20d   :  { %771 = vmatpush1.bf16.msra.mxu1 %v4102_v0  ;;  %v4604_v0 = vld [vmem:[#allocation6 + $0xc4] ss:$16 sps:$4 sm:$0xff]  }
 0x20e   :  { %772 = vmatprep.subr.bf16.mxu1 %v4111_v1  ;;  %v4607_v1 = vld [vmem:[#allocation6 + $0xcc] ss:$16 sps:$4 sm:$0xff]  }
 0x211   :  { %773 = vmatpush1.bf16.msra.mxu1 %v4110_v4  ;;  %v4610_v4 = vld [vmem:[#allocation6 + $0xe4] ss:$16 sps:$4 sm:$0xff]  }
 0x212   :  { %774 = vmatprep.subr.bf16.mxu1 %v4119_v5  ;;  %v4613_v5 = vld [vmem:[#allocation6 + $0xec] ss:$16 sps:$4 sm:$0xff]  }
 0x215   :  { %775 = vmatpush1.bf16.msra.mxu1 %v4118_v8  ;;  %v4614_v8 = vld [vmem:[#allocation6 + $0x100] ss:$16 sps:$4 sm:$0xff]  }
 0x216   :  { %866 = vmatprep.subr.bf16.mxu1 %v4067_v9  ;;  %v4616_v9 = vld [vmem:[#allocation6 + $0x104] ss:$16 sps:$4 sm:$0xff]  }
 0x218   :  { %793 = vmatmul.mubr.bf16.vlgmr.msra.gmra.mrb[16].mxu1 %v5314_v44 }
 0x219   :  { %867 = vmatpush1.bf16.msra.mxu1 %v4066_v12  ;;  %802 = vmatprep.mubr.bf16.mxu1 %v5165_v27  ;;  %v4619_v12 = vld [vmem:[#allocation6 + $0x10c] ss:$16 sps:$4 sm:$0xff]  }
 0x21a   :  { %868 = vmatprep.subr.bf16.mxu1 %v4075_v13  ;;  %v4622_v13 = vld [vmem:[#allocation6 + $0x124] ss:$16 sps:$4 sm:$0xff]  }
 0x21d   :  { %869 = vmatpush1.bf16.msra.mxu1 %v4074_v16  ;;  %v4623_v16 = vld [vmem:[#allocation6 + $0x128] ss:$16 sps:$4 sm:$0xff]  }
 0x21e   :  { %870 = vmatprep.subr.bf16.mxu1 %v4083_v17  ;;  %v5330_v17 = vshrl.u32 %v347_v11, 7 }
 0x220   :  { %803 = vmatmul.mubr.bf16.gmra.mrb[20].mxu1 %v5312_v43  ;;  %v5333_v22 = vsub.s32 0, %v5330_v17  ;;  %v365_v23 = vsub.s32 4, %v5330_v17  ;;  %v5342_v28 = vsub.s32 1, %v5330_v17 }
 0x221   :  { %871 = vmatpush1.bf16.msra.mxu1 %v4082_v20  ;;  %898 = vmatprep.mubr.bf16.mxu1 %v5165_v27  ;;  %v4626_v20 = vld [vmem:[#allocation6 + $0x140] ss:$16 sps:$4 sm:$0xff]  }
 0x222   :  { %872 = vmatprep.subr.bf16.mxu1 %v4091_v21  ;;  %v4629_v21 = vld [vmem:[#allocation6 + $0x148] ss:$16 sps:$4 sm:$0xff]   ;;  %v5347_v32 = vrot.slane %v5339_v26, %v5333_v22  ;;  %v5354_v36 = vrot.slane %v5339_v26, %v5342_v28 }
 0x225   :  { %873 = vmatpush1.bf16.msra.mxu1 %v4090_v24  ;;  %v4634_v24 = vld [vmem:[#allocation6 + $0x164] ss:$16 sps:$4 sm:$0xff]  }
 0x226   :  { %874 = vmatprep.subr.bf16.mxu1 %v4099_v25  ;;  %v4637_v25 = vld [vmem:[#allocation6 + $0x16c] ss:$16 sps:$4 sm:$0xff]  }
 0x229   :  { %875 = vmatpush1.bf16.msra.mxu1 %v4098_v29  ;;  %v369_v29 = vsub.s32 5, %v5330_v17 }
 0x22a   :  { %876 = vmatprep.subr.bf16.mxu1 %v4107_v30  ;;  %v4632_v30 = vld [vmem:[#allocation6 + $0x160] ss:$16 sps:$4 sm:$0xff]  }
 0x22d   :  { %877 = vmatpush1.bf16.msra.mxu1 %v4106_v33  ;;  %v5350_v33 = vrot.slane %v5339_v26, %v365_v23  ;;  %v4653_v23 = vld [vmem:[#allocation6 + $0x1c8] ss:$16 sps:$4 sm:$0xff]  }
 0x22e   :  { %878 = vmatprep.subr.bf16.mxu1 %v4115_v34  ;;  %v4640_v34 = vld [vmem:[#allocation6 + $0x184] ss:$16 sps:$4 sm:$0xff]  }
 0x231   :  { %879 = vmatpush1.bf16.msra.mxu1 %v4114_v37  ;;  %v5357_v37 = vrot.slane %v5339_v26, %v369_v29 }
 0x232   :  { %880 = vmatprep.subr.bf16.mxu1 %v4123_v38 }
 0x235   :  { %881 = vmatpush1.bf16.msra.mxu1 %v4122_v39 }
 0x236   :  { %3201 = vmatprep.subr.bf16.mxu1 %v4571_v41  ;;  %v4641_v41 = vld [vmem:[#allocation6 + $0x188] ss:$16 sps:$4 sm:$0xff]  }
 0x238   :  { %899 = vmatmul.mubr.bf16.vlgmr.msra.gmra.mrb[24].mxu1 %v5314_v44  ;;  %v4580_v44 = vld [vmem:[#allocation6 + $0x44] ss:$16 sps:$4 sm:$0xff]  }
 0x239   :  { %908 = vmatprep.mubr.bf16.mxu1 %v5165_v27  ;;  %3202 = vmatpush1.bf16.msra.mxu1 %v4569_v45 }
 0x23a   :  { %3203 = vmatprep.subr.bf16.mxu1 %v4577_v47  ;;  %3041 = vmatprep.subr.bf16.mxu0 %v4580_v44 }
 0x23b   :  { %3042 = vmatpush1.bf16.msra.mxu0 %v4578_v51 }
 0x23c   :  { %3043 = vmatprep.subr.bf16.mxu0 %v4586_v52 }
 0x23d   :  { %3204 = vmatpush1.bf16.msra.mxu1 %v4575_v49  ;;  %v4649_v49 = vld [vmem:[#allocation6 + $0x1ac] ss:$16 sps:$4 sm:$0xff]  }
 0x23e   :  { %3205 = vmatprep.subr.bf16.mxu1 %v4583_v50 }
 0x23f   :  { %3044 = vmatpush1.bf16.msra.mxu0 %v4584_v54 }
 0x240   :  { %909 = vmatmul.mubr.bf16.gmra.mrb[28].mxu1 %v5312_v43  ;;  %v4581_v43 = vld [vmem:[#allocation6 + $0x48] ss:$16 sps:$4 sm:$0xff]   ;;  %3045 = vmatprep.subr.bf16.mxu0 %v4592_v56 }
 0x241   :  { %3206 = vmatpush1.bf16.msra.mxu1 %v4581_v43 }
 0x242   :  { %3207 = vmatprep.subr.bf16.mxu1 %v4589_v53 }
 0x243   :  { %3046 = vmatpush1.bf16.msra.mxu0 %v4590_v58  ;;  %v4644_v58 = vld [vmem:[#allocation6 + $0x1a0] ss:$16 sps:$4 sm:$0xff]  }
 0x244   :  { %3047 = vmatprep.subr.bf16.mxu0 %v4598_v60  ;;  %v4652_v60 = vld [vmem:[#allocation6 + $0x1c4] ss:$16 sps:$4 sm:$0xff]  }
 0x245   :  { %3208 = vmatpush1.bf16.msra.mxu1 %v4587_v55 }
 0x246   :  { %3209 = vmatprep.subr.bf16.mxu1 %v4595_v57 }
 0x247   :  { %3048 = vmatpush1.bf16.msra.mxu0 %v4596_v62 }
 0x248   :  { %3049 = vmatprep.subr.bf16.mxu0 %v4604_v0 }
 0x249   :  { %3210 = vmatpush1.bf16.msra.mxu1 %v4593_v59  ;;  %v4647_v59 = vld [vmem:[#allocation6 + $0x1a8] ss:$16 sps:$4 sm:$0xff]  }
 0x24a   :  { %3211 = vmatprep.subr.bf16.mxu1 %v4601_v61 }
 0x24b   :  { %3050 = vmatpush1.bf16.msra.mxu0 %v4602_v2 }
 0x24c   :  { %3051 = vmatprep.subr.bf16.mxu0 %v4610_v4 }
 0x24d   :  { %3212 = vmatpush1.bf16.msra.mxu1 %v4599_v63 }
 0x24e   :  { %3213 = vmatprep.subr.bf16.mxu1 %v4607_v1  ;;  %v4655_v1 = vld [vmem:[#allocation6 + $0x1cc] ss:$16 sps:$4 sm:$0xff]  }
 0x24f   :  { %3052 = vmatpush1.bf16.msra.mxu0 %v4608_v6 }
 0x250   :  { %3053 = vmatprep.subr.bf16.mxu0 %v4616_v9 }
 0x251   :  { %3214 = vmatpush1.bf16.msra.mxu1 %v4605_v3 }
 0x252   :  { %3215 = vmatprep.subr.bf16.mxu1 %v4613_v5 }
 0x253   :  { %3054 = vmatpush1.bf16.msra.mxu0 %v4614_v8 }
 0x254   :  { %3055 = vmatprep.subr.bf16.mxu0 %v4622_v13  ;;  %v361_v13 = vsub.s32 3, %v5330_v17 }
 0x255   :  { %3216 = vmatpush1.bf16.msra.mxu1 %v4611_v7 }
 0x256   :  { %3217 = vmatprep.subr.bf16.mxu1 %v4619_v12  ;;  %v357_v12 = vsub.s32 2, %v5330_v17 }
 0x257   :  { %3056 = vmatpush1.bf16.msra.mxu0 %v4620_v15 }
 0x258   :  { %3057 = vmatprep.subr.bf16.mxu0 %v4628_v18 }
 0x259   :  { %3218 = vmatpush1.bf16.msra.mxu1 %v4617_v10 }
 0x25a   :  { %3219 = vmatprep.subr.bf16.mxu1 %v4625_v14  ;;  %v4650_v14 = vld [vmem:[#allocation6 + $0x1c0] ss:$16 sps:$4 sm:$0xff]  }
 0x25b   :  { %3058 = vmatpush1.bf16.msra.mxu0 %v4626_v20 }
 0x25c   :  { %3059 = vmatprep.subr.bf16.mxu0 %v4634_v24  ;;  %v4658_v24 = vld [vmem:[#allocation6 + $0x1e4] ss:$16 sps:$4 sm:$0xff]  }
 0x25d   :  { %3220 = vmatpush1.bf16.msra.mxu1 %v4623_v16 }
 0x25e   :  { %3221 = vmatprep.subr.bf16.mxu1 %v4631_v19 }
 0x25f   :  { %3060 = vmatpush1.bf16.msra.mxu0 %v4632_v30 }
 0x260   :  { %3061 = vmatprep.subr.bf16.mxu0 %v4640_v34 }
 0x261   :  { %3222 = vmatpush1.bf16.msra.mxu1 %v4629_v21 }
 0x262   :  { %3223 = vmatprep.subr.bf16.mxu1 %v4637_v25 }
 0x263   :  { %3062 = vmatpush1.bf16.msra.mxu0 %v4638_v40 }
 0x264   :  { %3063 = vmatprep.subr.bf16.mxu0 %v4646_v48 }
 0x265   :  { %3224 = vmatpush1.bf16.msra.mxu1 %v4635_v31 }
 0x266   :  { %3225 = vmatprep.subr.bf16.mxu1 %v4643_v35 }
 0x267   :  { %3064 = vmatpush1.bf16.msra.mxu0 %v4644_v58 }
 0x268   :  { %3065 = vmatprep.subr.bf16.mxu0 %v4652_v60  ;;  %v4667_v60 = vld [vmem:[#allocation6 + $0x20c] ss:$16 sps:$4 sm:$0xff]  }
 0x269   :  { %3226 = vmatpush1.bf16.msra.mxu1 %v4641_v41 }
 0x26a   :  { %3227 = vmatprep.subr.bf16.mxu1 %v4649_v49 }
 0x26b   :  { %3066 = vmatpush1.bf16.msra.mxu0 %v4650_v14 }
 0x26c   :  { %3067 = vmatprep.subr.bf16.mxu0 %v4658_v24 }
 0x26d   :  { %3228 = vmatpush1.bf16.msra.mxu1 %v4647_v59 }
 0x26e   :  { %3229 = vmatprep.subr.bf16.mxu1 %v4655_v1 }
 0x271   :  { %3230 = vmatpush1.bf16.msra.mxu1 %v4653_v23 }
 0x2cb   :  { %v741_v38 = vpop.f32.mrb[8].mxu1  ;;  %v847_v39 = vpop.f32.mrb[0].mxu0 }
 0x2cc   :  { %v742_v42 = vadd.f32 %v741_v38, %v5347_v32  ;;  %v848_v45 = vadd.f32 %v847_v39, %v5350_v33  ;;  %v743_v46 = vpop.f32.mrb[9].mxu1  ;;  %v849_v47 = vpop.f32.mrb[1].mxu0  ;;  %v4661_v38 = vld [vmem:[#allocation6 + $0x1ec] ss:$16 sps:$4 sm:$0xff]  }
 0x2cd   :  { %v744_v44 = vadd.f32 %v743_v46, %v5354_v36  ;;  %v850_v50 = vadd.f32 %v849_v47, %v5357_v37  ;;  %v745_v51 = vpop.f32.mrb[10].mxu1  ;;  %v851_v43 = vpop.f32.mrb[2].mxu0  ;;  %3231 = vmatprep.subr.bf16.mxu1 %v4661_v38 }
 0x2ce   :  { %v746_v52 = vadd.f32 %v745_v51, %v5347_v32  ;;  %v852_v53 = vadd.f32 %v851_v43, %v5350_v33  ;;  %v747_v54 = vpop.f32.mrb[11].mxu1  ;;  %v853_v55 = vpop.f32.mrb[3].mxu0  ;;  %v919_v61 = vmax.f32 %v742_v42, 0.0  ;;  %v923_v62 = vmax.f32 %v848_v45, 0.0  ;;  %v4659_v51 = vld [vmem:[#allocation6 + $0x1e8] ss:$16 sps:$4 sm:$0xff]  }
 0x2cf   :  { %v748_v56 = vadd.f32 %v747_v54, %v5354_v36  ;;  %v854_v57 = vadd.f32 %v853_v55, %v5357_v37  ;;  %v920_v2 = vmax.f32 %v744_v44, 0.0  ;;  %v924_v3 = vmax.f32 %v850_v50, 0.0  ;;  %v4656_v50 = vld [vmem:[#allocation6 + $0x1e0] ss:$16 sps:$4 sm:$0xff]   ;;  %v4664_v55 = vld [vmem:[#allocation6 + $0x204] ss:$16 sps:$4 sm:$0xff]   ;;  %3232 = vmatpush1.bf16.msra.mxu1 %v4659_v51 }
 0x2d0   :  { %v927_v63 = vmax.f32 %v746_v52, 0.0  ;;  %v931_v0 = vmax.f32 %v852_v53, 0.0  ;;  %3068 = vmatpush1.bf16.msra.mxu0 %v4656_v50  ;;  %3242 = vmatprep.subr.bf16.mxu1 %v4667_v60  ;;  %v358_v60 = vrot.slane %v5339_v26, %v357_v12 }
 0x2d1   :  { %v928_v4 = vmax.f32 %v748_v56, 0.0  ;;  %v932_v5 = vmax.f32 %v854_v57, 0.0  ;;  %3078 = vmatprep.subr.bf16.mxu0 %v4664_v55 }
 0x2d2   :  { %v951_v6 = vpack.c.bf16 %v927_v63, %v919_v61  ;;  %v955_v7 = vpack.c.bf16 %v931_v0, %v923_v62 }
 0x2d3   :  { %v952_v8 = vpack.c.bf16 %v928_v4, %v920_v2  ;;  %v956_v9 = vpack.c.bf16 %v932_v5, %v924_v3  ;;  %v751_v10 = vpop.f32.mrb[12].mxu1  ;;  %v857_v11 = vpop.f32.mrb[4].mxu0 }
 0x2d4   :  { %v967_v15 = vunpack.i.l.bf16 %v951_v6  ;;  %v968_v16 = vunpack.i.h.bf16 %v951_v6  ;;  %v1007_v18 = vunpack.i.l.bf16 %v955_v7  ;;  %v1008_v19 = vunpack.i.h.bf16 %v955_v7  ;;  %v753_v20 = vpop.f32.mrb[13].mxu1  ;;  %v859_v21 = vpop.f32.mrb[5].mxu0 }
 0x2d5   :  { %v977_v25 = vunpack.i.l.bf16 %v952_v8  ;;  %v978_v29 = vunpack.i.h.bf16 %v952_v8  ;;  %v1017_v30 = vunpack.i.l.bf16 %v956_v9  ;;  %v1018_v31 = vunpack.i.h.bf16 %v956_v9  ;;  %v755_v34 = vpop.f32.mrb[14].mxu1  ;;  %v861_v35 = vpop.f32.mrb[6].mxu0 }
 0x2d6   :  { %v969_v39 = vmax.f32 %v967_v15, %v968_v16  ;;  %v1009_v40 = vmax.f32 %v1007_v18, %v1008_v19  ;;  %v752_v41 = vadd.f32 %v751_v10, %v5347_v32  ;;  %v858_v42 = vadd.f32 %v857_v11, %v5350_v33  ;;  %v757_v45 = vpop.f32.mrb[15].mxu1  ;;  %v863_v46 = vpop.f32.mrb[7].mxu0 }
 0x2d7   :  { %v979_v47 = vmax.f32 %v977_v25, %v978_v29  ;;  %v1019_v48 = vmax.f32 %v1017_v30, %v1018_v31  ;;  %v754_v49 = vadd.f32 %v753_v20, %v5354_v36  ;;  %v860_v44 = vadd.f32 %v859_v21, %v5357_v37 }
 0x2d8   :  { %v970_v43 = vrot.slane %v969_v39, 4  ;;  %v1010_v52 = vrot.slane %v1009_v40, 4  ;;  %v935_v53 = vmax.f32 %v752_v41, 0.0  ;;  %v939_v54 = vmax.f32 %v858_v42, 0.0 }
 0x2d9   :  { %v980_v56 = vrot.slane %v979_v47, 4  ;;  %v1020_v57 = vrot.slane %v1019_v48, 4  ;;  %v936_v58 = vmax.f32 %v754_v49, 0.0  ;;  %v940_v59 = vmax.f32 %v860_v44, 0.0 }
 0x2da   :  { %v971_v61 = vmax.f32 %v969_v39, %v970_v43  ;;  %v1011_v62 = vmax.f32 %v1009_v40, %v1010_v52  ;;  %v756_v63 = vadd.f32 %v755_v34, %v5347_v32  ;;  %v862_v0 = vadd.f32 %v861_v35, %v5350_v33 }
 0x2db   :  { %v981_v1 = vmax.f32 %v979_v47, %v980_v56  ;;  %v1021_v2 = vmax.f32 %v1019_v48, %v1020_v57  ;;  %v758_v3 = vadd.f32 %v757_v45, %v5354_v36  ;;  %v864_v4 = vadd.f32 %v863_v46, %v5357_v37 }
 0x2dc   :  { %v972_v5 = vrot.slane %v971_v61, 2  ;;  %v1012_v6 = vrot.slane %v1011_v62, 2  ;;  %v943_v7 = vmax.f32 %v756_v63, 0.0  ;;  %v947_v8 = vmax.f32 %v862_v0, 0.0 }
 0x2dd   :  { %v982_v9 = vrot.slane %v981_v1, 2  ;;  %v1022_v10 = vrot.slane %v1021_v2, 2  ;;  %v944_v11 = vmax.f32 %v758_v3, 0.0  ;;  %v948_v14 = vmax.f32 %v864_v4, 0.0 }
 0x2de   :  { %v973_v32 = vmax.f32 %v971_v61, %v972_v5  ;;  %v1013_v33 = vmax.f32 %v1011_v62, %v1012_v6  ;;  %v959_v15 = vpack.c.bf16 %v943_v7, %v935_v53  ;;  %v963_v16 = vpack.c.bf16 %v947_v8, %v939_v54 }
 0x2df   :  { %v983_v18 = vmax.f32 %v981_v1, %v982_v9  ;;  %v1023_v36 = vmax.f32 %v1021_v2, %v1022_v10  ;;  %v960_v19 = vpack.c.bf16 %v944_v11, %v936_v58  ;;  %v964_v37 = vpack.c.bf16 %v948_v14, %v940_v59 }
 0x2e0   :  { %v974_v20 = vrot.slane %v973_v32, 1  ;;  %v1014_v21 = vrot.slane %v1013_v33, 1  ;;  %v1047_v23 = vunpack.i.l.bf16 %v959_v15  ;;  %v1048_v24 = vunpack.i.h.bf16 %v959_v15 }
 0x2e1   :  { %v984_v25 = vrot.slane %v983_v18, 1  ;;  %v1024_v29 = vrot.slane %v1023_v36, 1  ;;  %v1087_v30 = vunpack.i.l.bf16 %v963_v16  ;;  %v1088_v31 = vunpack.i.h.bf16 %v963_v16 }
 0x2e2   :  { %v975_v34 = vmax.f32 %v973_v32, %v974_v20  ;;  %v1015_v35 = vmax.f32 %v1013_v33, %v1014_v21  ;;  %v1049_v38 = vmax.f32 %v1047_v23, %v1048_v24  ;;  %v1057_v39 = vunpack.i.l.bf16 %v960_v19 }
 0x2e3   :  { %v985_v40 = vmax.f32 %v983_v18, %v984_v25  ;;  %v1025_v41 = vmax.f32 %v1023_v36, %v1024_v29  ;;  %v1089_v42 = vmax.f32 %v1087_v30, %v1088_v31  ;;  %v1058_v45 = vunpack.i.h.bf16 %v960_v19 }
 0x2e4   :  { %v976_v46 = vpack.i.bf16 %v975_v34, %v975_v34  ;;  %v1016_v47 = vpack.i.bf16 %v1015_v35, %v1015_v35  ;;  %v1050_v48 = vrot.slane %v1049_v38, 4  ;;  %v1097_v49 = vunpack.i.l.bf16 %v964_v37 }
 0x2e5   :  { %v986_v44 = vpack.i.bf16 %v985_v40, %v985_v40  ;;  %v1026_v50 = vpack.i.bf16 %v1025_v41, %v1025_v41  ;;  %v1090_v51 = vrot.slane %v1089_v42, 4  ;;  %v1059_v43 = vmax.f32 %v1057_v39, %v1058_v45 }
 0x2e6   :  { %v1051_v52 = vmax.f32 %v1049_v38, %v1050_v48  ;;  %v1098_v53 = vunpack.i.h.bf16 %v964_v37  ;;  %v362_v63 = vrot.slane %v5339_v26, %v361_v13 }
 0x2e7   :  { %v5377_v54 = vcombine.low %v976_v46, %v986_v44  ;;  %v5379_v55 = vcombine.low %v1016_v47, %v1026_v50  ;;  %v1091_v56 = vmax.f32 %v1089_v42, %v1090_v51  ;;  %v1060_v57 = vrot.slane %v1059_v43, 4 }
 0x2e8   :  { %v1052_v58 = vrot.slane %v1051_v52, 2  ;;  %v1099_v59 = vmax.f32 %v1097_v49, %v1098_v53 }
 0x2e9   :  { %v1092_v61 = vrot.slane %v1091_v56, 2  ;;  %v1061_v62 = vmax.f32 %v1059_v43, %v1060_v57 }
 0x2ea   :  { %v1053_v0 = vmax.f32 %v1051_v52, %v1052_v58  ;;  %v1100_v1 = vrot.slane %v1099_v59, 4 }
 0x2eb   :  { %v1093_v2 = vmax.f32 %v1091_v56, %v1092_v61  ;;  %v1062_v3 = vrot.slane %v1061_v62, 2  ;;  %v794_v4 = vpop.f32.mrb[16].mxu1 }
 0x2ec   :  { %v1054_v5 = vrot.slane %v1053_v0, 1  ;;  %v1101_v6 = vmax.f32 %v1099_v59, %v1100_v1  ;;  %v795_v7 = vadd.f32 %v794_v4, %v358_v60  ;;  %v796_v8 = vpop.f32.mrb[17].mxu1 }
 0x2ed   :  { %v1094_v9 = vrot.slane %v1093_v2, 1  ;;  %v1063_v10 = vmax.f32 %v1061_v62, %v1062_v3  ;;  %v797_v11 = vadd.f32 %v796_v8, %v362_v63  ;;  %v798_v14 = vpop.f32.mrb[18].mxu1 }
 0x2ee   :  { %v1055_v32 = vmax.f32 %v1053_v0, %v1054_v5  ;;  %v1102_v33 = vrot.slane %v1101_v6, 2  ;;  %v799_v15 = vadd.f32 %v798_v14, %v358_v60  ;;  %v800_v16 = vpop.f32.mrb[19].mxu1  ;;  %v921_v20 = vmax.f32 %v795_v7, 0.0 }
 0x2ef   :  { %v1095_v18 = vmax.f32 %v1093_v2, %v1094_v9  ;;  %v1064_v36 = vrot.slane %v1063_v10, 1  ;;  %v801_v19 = vadd.f32 %v800_v16, %v362_v63  ;;  %v922_v25 = vmax.f32 %v797_v11, 0.0 }
 0x2f0   :  { %v1103_v37 = vmax.f32 %v1101_v6, %v1102_v33  ;;  %v929_v21 = vmax.f32 %v799_v15, 0.0  ;;  %v1056_v23 = vpack.i.bf16 %v1055_v32, %v1055_v32 }
 0x2f1   :  { %v1065_v24 = vmax.f32 %v1063_v10, %v1064_v36  ;;  %v930_v29 = vmax.f32 %v801_v19, 0.0  ;;  %v1096_v34 = vpack.i.bf16 %v1095_v18, %v1095_v18  ;;  %v5166_v10 = vmov 1966171168  }
 0x2f2   :  { %v1104_v30 = vrot.slane %v1103_v37, 1  ;;  %v953_v31 = vpack.c.bf16 %v929_v21, %v921_v20 }
 0x2f3   :  { %v1066_v35 = vpack.i.bf16 %v1065_v24, %v1065_v24  ;;  %v954_v38 = vpack.c.bf16 %v930_v29, %v922_v25  ;;  %v804_v39 = vpop.f32.mrb[20].mxu1 }
 0x2f4   :  { %v1105_v40 = vmax.f32 %v1103_v37, %v1104_v30  ;;  %v987_v41 = vunpack.i.l.bf16 %v953_v31  ;;  %v988_v42 = vunpack.i.h.bf16 %v953_v31  ;;  %v805_v45 = vadd.f32 %v804_v39, %v358_v60  ;;  %v806_v46 = vpop.f32.mrb[21].mxu1 }
 0x2f5   :  { %v5387_v47 = vcombine.low %v1056_v23, %v1066_v35  ;;  %v997_v48 = vunpack.i.l.bf16 %v954_v38  ;;  %v998_v49 = vunpack.i.h.bf16 %v954_v38  ;;  %v807_v44 = vadd.f32 %v806_v46, %v362_v63  ;;  %v808_v50 = vpop.f32.mrb[22].mxu1 }
 0x2f6   :  { %v1106_v51 = vpack.i.bf16 %v1105_v40, %v1105_v40  ;;  %v989_v43 = vmax.f32 %v987_v41, %v988_v42  ;;  %v809_v52 = vadd.f32 %v808_v50, %v358_v60  ;;  %v810_v53 = vpop.f32.mrb[23].mxu1  ;;  %v937_v61 = vmax.f32 %v805_v45, 0.0 }
 0x2f7   :  { %v999_v56 = vmax.f32 %v997_v48, %v998_v49  ;;  %v811_v57 = vadd.f32 %v810_v53, %v362_v63  ;;  %v938_v1 = vmax.f32 %v807_v44, 0.0  ;;  %v1149_v60 = vunpack.c.l.s4 %v5166_v10 }
 0x2f8   :  { %v5389_v58 = vcombine.low %v1096_v34, %v1106_v51  ;;  %v990_v59 = vrot.slane %v989_v43, 4  ;;  %v945_v62 = vmax.f32 %v809_v52, 0.0  ;;  %v373_v31 = vsub.s32 6, %v5330_v17 }
 0x2f9   :  { %v1000_v0 = vrot.slane %v999_v56, 4  ;;  %v946_v2 = vmax.f32 %v811_v57, 0.0  ;;  %v1150_v19 = vunpack.c.0.s8 %v1149_v60  ;;  %v377_v39 = vsub.s32 7, %v5330_v17 }
 0x2fa   :  { %v991_v3 = vmax.f32 %v989_v43, %v990_v59  ;;  %v961_v4 = vpack.c.bf16 %v945_v62, %v937_v61  ;;  %v374_v46 = vrot.slane %v5339_v26, %v373_v31 }
 0x2fb   :  { %v1001_v5 = vmax.f32 %v999_v56, %v1000_v0  ;;  %v962_v6 = vpack.c.bf16 %v946_v2, %v938_v1  ;;  %v5393_v34 = vsub.s32 %v1150_v19, %v5330_v17  ;;  %v378_v50 = vrot.slane %v5339_v26, %v377_v39 }
 0x2fc   :  { %v992_v7 = vrot.slane %v991_v3, 2  ;;  %v1067_v8 = vunpack.i.l.bf16 %v961_v4  ;;  %v1068_v9 = vunpack.i.h.bf16 %v961_v4 }
 0x2fd   :  { %v1002_v11 = vrot.slane %v1001_v5, 2  ;;  %v1077_v14 = vunpack.i.l.bf16 %v962_v6  ;;  %v1078_v63 = vunpack.i.h.bf16 %v962_v6  ;;  %v1154_v48 = vrot.slane %v5377_v54, %v5393_v34 }
 0x2fe   :  { %v993_v32 = vmax.f32 %v991_v3, %v992_v7  ;;  %v1069_v33 = vmax.f32 %v1067_v8, %v1068_v9  ;;  %v1203_v26 = vrot.slane %v5387_v47, %v5393_v34 }
 0x2ff   :  { %v1003_v15 = vmax.f32 %v1001_v5, %v1002_v11  ;;  %v1079_v16 = vmax.f32 %v1077_v14, %v1078_v63 }
 0x300   :  { %v994_v18 = vrot.slane %v993_v32, 1  ;;  %v1070_v36 = vrot.slane %v1069_v33, 4 }
 0x301   :  { %v1004_v37 = vrot.slane %v1003_v15, 1  ;;  %v1080_v20 = vrot.slane %v1079_v16, 4 }
 0x302   :  { %v995_v21 = vmax.f32 %v993_v32, %v994_v18  ;;  %v1071_v23 = vmax.f32 %v1069_v33, %v1070_v36 }
 0x303   :  { %v1005_v24 = vmax.f32 %v1003_v15, %v1004_v37  ;;  %v1081_v25 = vmax.f32 %v1079_v16, %v1080_v20 }
 0x304   :  { %v996_v29 = vpack.i.bf16 %v995_v21, %v995_v21  ;;  %v1072_v30 = vrot.slane %v1071_v23, 2 }
 0x305   :  { %v1006_v35 = vpack.i.bf16 %v1005_v24, %v1005_v24  ;;  %v1082_v38 = vrot.slane %v1081_v25, 2 }
 0x306   :  { %v1073_v40 = vmax.f32 %v1071_v23, %v1072_v30 }
 0x307   :  { %v1145_v41 = vcombine.low %v996_v29, %v1006_v35  ;;  %v1083_v42 = vmax.f32 %v1081_v25, %v1082_v38 }
 0x308   :  { %v1074_v45 = vrot.slane %v1073_v40, 1 }
 0x309   :  { %v1161_v49 = vrot.slane %v1145_v41, %v5393_v34  ;;  %v1084_v44 = vrot.slane %v1083_v42, 1 }
 0x30a   :  { %v1075_v51 = vmax.f32 %v1073_v40, %v1074_v45 }
 0x30b   :  { %v5401_v43 = vcombine.low %v1154_v48, %v1161_v49  ;;  %v1085_v52 = vmax.f32 %v1083_v42, %v1084_v44  ;;  %v900_v53 = vpop.f32.mrb[24].mxu1 }
 0x30c   :  { %v1076_v56 = vpack.i.bf16 %v1075_v51, %v1075_v51  ;;  %v901_v57 = vadd.f32 %v900_v53, %v374_v46  ;;  %v902_v59 = vpop.f32.mrb[25].mxu1 }
 0x30d   :  { %v1086_v61 = vpack.i.bf16 %v1085_v52, %v1085_v52  ;;  %v903_v62 = vadd.f32 %v902_v59, %v378_v50  ;;  %v904_v0 = vpop.f32.mrb[26].mxu1 }
 0x30e   :  { %v905_v1 = vadd.f32 %v904_v0, %v374_v46  ;;  %v906_v2 = vpop.f32.mrb[27].mxu1  ;;  %v925_v4 = vmax.f32 %v901_v57, 0.0 }
 0x30f   :  { %v1194_v3 = vcombine.low %v1076_v56, %v1086_v61  ;;  %v907_v54 = vadd.f32 %v906_v2, %v378_v50  ;;  %v926_v7 = vmax.f32 %v903_v62, 0.0 }
 0x310   :  { %v933_v5 = vmax.f32 %v905_v1, 0.0 }
 0x311   :  { %v1210_v6 = vrot.slane %v1194_v3, %v5393_v34  ;;  %v934_v8 = vmax.f32 %v907_v54, 0.0 }
 0x312   :  { %v957_v9 = vpack.c.bf16 %v933_v5, %v925_v4  ;;  %v5167_v4 = vmov 1935823168  }
 0x313   :  { %v5406_v10 = vcombine.low %v1203_v26, %v1210_v6  ;;  %v958_v60 = vpack.c.bf16 %v934_v8, %v926_v7  ;;  %v910_v11 = vpop.f32.mrb[28].mxu1  ;;  %v1244_v5 = vunpack.c.l.s4 %v5167_v4 }
 0x314   :  { %v1027_v14 = vunpack.i.l.bf16 %v957_v9  ;;  %v1028_v63 = vunpack.i.h.bf16 %v957_v9  ;;  %v911_v32 = vadd.f32 %v910_v11, %v374_v46  ;;  %v912_v33 = vpop.f32.mrb[29].mxu1 }
 0x315   :  { %v1037_v15 = vunpack.i.l.bf16 %v958_v60  ;;  %v1038_v16 = vunpack.i.h.bf16 %v958_v60  ;;  %v913_v18 = vadd.f32 %v912_v33, %v378_v50  ;;  %v914_v36 = vpop.f32.mrb[30].mxu1  ;;  %v1168_v60 = vrot.slane %v5379_v55, %v5393_v34 }
 0x316   :  { %v1029_v19 = vmax.f32 %v1027_v14, %v1028_v63  ;;  %v915_v37 = vadd.f32 %v914_v36, %v374_v46  ;;  %v916_v47 = vpop.f32.mrb[31].mxu1  ;;  %v941_v24 = vmax.f32 %v911_v32, 0.0  ;;  %v1245_v14 = vunpack.c.0.s8 %v1244_v5 }
 0x317   :  { %v1039_v20 = vmax.f32 %v1037_v15, %v1038_v16  ;;  %v917_v21 = vadd.f32 %v916_v47, %v378_v50  ;;  %v942_v30 = vmax.f32 %v913_v18, 0.0  ;;  %v1184_v18 = vrot.slane %v5401_v43, %v5393_v34 }
 0x318   :  { %v1030_v23 = vrot.slane %v1029_v19, 4  ;;  %v949_v25 = vmax.f32 %v915_v37, 0.0  ;;  %v1217_v55 = vrot.slane %v5389_v58, %v5393_v34  ;;  %v1233_v43 = vrot.slane %v5406_v10, %v5393_v34 }
 0x319   :  { %v1040_v29 = vrot.slane %v1039_v20, 4  ;;  %v950_v31 = vmax.f32 %v917_v21, 0.0 }
 0x31a   :  { %v1031_v35 = vmax.f32 %v1029_v19, %v1030_v23  ;;  %v965_v38 = vpack.c.bf16 %v949_v25, %v941_v24  ;;  %v1248_v19 = vsub.s32 %v1245_v14, %v5330_v17  ;;  %v5058_v17 = vld [vmem:[%s5567_s11 + $0x70] sm:$0xff]  }
 0x31b   :  { %v1041_v39 = vmax.f32 %v1039_v20, %v1040_v29  ;;  %v966_v40 = vpack.c.bf16 %v950_v31, %v942_v30 }
 0x31c   :  { %v1032_v41 = vrot.slane %v1031_v35, 2  ;;  %v1107_v42 = vunpack.i.l.bf16 %v965_v38  ;;  %v1108_v45 = vunpack.i.h.bf16 %v965_v38 }
 0x31d   :  { %v1042_v48 = vrot.slane %v1041_v39, 2  ;;  %v1117_v49 = vunpack.i.l.bf16 %v966_v40  ;;  %v1118_v44 = vunpack.i.h.bf16 %v966_v40 }
 0x31e   :  { %v1033_v46 = vmax.f32 %v1031_v35, %v1032_v41  ;;  %v1109_v51 = vmax.f32 %v1107_v42, %v1108_v45 }
 0x31f   :  { %v1043_v52 = vmax.f32 %v1041_v39, %v1042_v48  ;;  %v1119_v50 = vmax.f32 %v1117_v49, %v1118_v44 }
 0x320   :  { %v1034_v53 = vrot.slane %v1033_v46, 1  ;;  %v1110_v56 = vrot.slane %v1109_v51, 4 }
 0x321   :  { %v1044_v57 = vrot.slane %v1043_v52, 1  ;;  %v1120_v59 = vrot.slane %v1119_v50, 4 }
 0x322   :  { %v1035_v61 = vmax.f32 %v1033_v46, %v1034_v53  ;;  %v1111_v62 = vmax.f32 %v1109_v51, %v1110_v56 }
 0x323   :  { %v1045_v0 = vmax.f32 %v1043_v52, %v1044_v57  ;;  %v1121_v1 = vmax.f32 %v1119_v50, %v1120_v59 }
 0x324   :  { %v1036_v2 = vpack.i.bf16 %v1035_v61, %v1035_v61  ;;  %v1112_v3 = vrot.slane %v1111_v62, 2 }
 0x325   :  { %v1046_v54 = vpack.i.bf16 %v1045_v0, %v1045_v0  ;;  %v1122_v26 = vrot.slane %v1121_v1, 2 }
 0x326   :  { %v1113_v6 = vmax.f32 %v1111_v62, %v1112_v3 }
 0x327   :  { %v1147_v7 = vcombine.low %v1036_v2, %v1046_v54  ;;  %v1123_v8 = vmax.f32 %v1121_v1, %v1122_v26 }
 0x328   :  { %v1114_v9 = vrot.slane %v1113_v6, 1 }
 0x329   :  { %v1175_v11 = vrot.slane %v1147_v7, %v5393_v34  ;;  %v1124_v63 = vrot.slane %v1123_v8, 1 }
 0x32a   :  { %v1115_v32 = vmax.f32 %v1113_v6, %v1114_v9 }
 0x32b   :  { %v1177_v33 = vcombine.low %v1168_v60, %v1175_v11  ;;  %v1125_v15 = vmax.f32 %v1123_v8, %v1124_v63 }
 0x32c   :  { %v1116_v16 = vpack.i.bf16 %v1115_v32, %v1115_v32 }
 0x32d   :  { %v1191_v36 = vrot.slane %v1177_v33, %v5393_v34  ;;  %v1126_v37 = vpack.i.bf16 %v1125_v15, %v1125_v15 }
 0x32f   :  { %v1192_v47 = vcombine.low %v1184_v18, %v1191_v36  ;;  %v4124_v20 = vcombine.low %v1191_v36, %v1191_v36  ;;  %v1196_v21 = vcombine.low %v1116_v16, %v1126_v37 }
 0x331   :  { %v1249_v23 = vrot.slane %v1192_v47, %v1248_v19  ;;  %v1224_v24 = vrot.slane %v1196_v21, %v5393_v34  ;;  %v1256_v25 = vrot.slane %v4124_v20, %v1248_v19 }
 0x333   :  { %v1226_v29 = vcombine.low %v1217_v55, %v1224_v24  ;;  %v1257_v30 = vcombine.high %v1249_v23, %v1249_v23  ;;  %v1258_v35 = vcombine.high %v1256_v25, %v1256_v25  ;;  %v1265_v38 = vrot.slane %v1249_v23, %v1248_v19 }
 0x334   :  { %v1279_v42 = vrot.slane %v1256_v25, %v1248_v19 }
 0x335   :  { %v1240_v31 = vrot.slane %v1226_v29, %v5393_v34  ;;  %v1272_v41 = vrot.slane %v1257_v30, %v1248_v19  ;;  %v1286_v58 = vrot.slane %v1258_v35, %v1248_v19  ;;  %v1332_v49 = vunpack.c.l.b16 %v1265_v38 }
 0x336   :  { %v1333_v44 = vunpack.c.h.b16 %v1265_v38  ;;  %v1336_v56 = vunpack.c.l.b16 %v1279_v42  ;;  %v1337_v57 = vunpack.c.h.b16 %v1279_v42 }
 0x337   :  { %v1241_v39 = vcombine.low %v1233_v43, %v1240_v31  ;;  %v4125_v40 = vcombine.low %v1240_v31, %v1240_v31  ;;  %v1334_v53 = vunpack.c.l.b16 %v1272_v41  ;;  %v1335_v10 = vunpack.c.h.b16 %v1272_v41 }
 0x338   :  { %v1338_v1 = vunpack.c.l.b16 %v1286_v58  ;;  %v1339_v2 = vunpack.c.h.b16 %v1286_v58  ;;  %v4665_v58 = vld [vmem:[#allocation6 + $0x208] ss:$16 sps:$4 sm:$0xff]  }
 0x339   :  { %v1294_v45 = vrot.slane %v1241_v39, %v1248_v19  ;;  %v1301_v48 = vrot.slane %v4125_v40, %v1248_v19 }
 0x33b   :  { %v1302_v46 = vcombine.high %v1294_v45, %v1294_v45  ;;  %v1303_v51 = vcombine.high %v1301_v48, %v1301_v48  ;;  %v1310_v52 = vrot.slane %v1294_v45, %v1248_v19  ;;  %v1324_v50 = vrot.slane %v1301_v48, %v1248_v19  ;;  %v4662_v48 = vld [vmem:[#allocation6 + $0x200] ss:$16 sps:$4 sm:$0xff]  }
 0x33d   :  { %v1317_v59 = vrot.slane %v1302_v46, %v1248_v19  ;;  %v1331_v61 = vrot.slane %v1303_v51, %v1248_v19  ;;  %v1340_v62 = vunpack.c.l.b16 %v1310_v52  ;;  %v1341_v0 = vunpack.c.h.b16 %v1310_v52  ;;  %v4670_v46 = vld [vmem:[#allocation6 + $0x224] ss:$16 sps:$4 sm:$0xff]   ;;  %v4673_v51 = vld [vmem:[#allocation6 + $0x22c] ss:$16 sps:$4 sm:$0xff]   ;;  %v4671_v52 = vld [vmem:[#allocation6 + $0x228] ss:$16 sps:$4 sm:$0xff]  }
 0x33e   :  { %v1344_v3 = vunpack.c.l.b16 %v1324_v50  ;;  %v1345_v54 = vunpack.c.h.b16 %v1324_v50  ;;  %v4676_v50 = vld [vmem:[#allocation6 + $0x244] ss:$16 sps:$4 sm:$0xff]  }
 0x33f   :  { %v1342_v4 = vunpack.c.l.b16 %v1317_v59  ;;  %v1343_v5 = vunpack.c.h.b16 %v1317_v59  ;;  %v1346_v26 = vunpack.c.l.b16 %v1331_v61  ;;  %v1347_v6 = vunpack.c.h.b16 %v1331_v61  ;;  %v4685_v59 = vld [vmem:[#allocation6 + $0x26c] ss:$16 sps:$4 sm:$0xff]   ;;  %v4680_v61 = vld [vmem:[#allocation6 + $0x260] ss:$16 sps:$4 sm:$0xff]  }
 0x340   :  { %v1348_v7 = vrot.slane %v1340_v62, 7  ;;  %v1351_v8 = vrot.slane %v1341_v0, 7  ;;  %v1357_v9 = vrot.slane %v1344_v3, 7  ;;  %v1359_v60 = vrot.slane %v1345_v54, 7  ;;  %v4683_v62 = vld [vmem:[#allocation6 + $0x268] ss:$16 sps:$4 sm:$0xff]  }
 0x341   :  { %v1353_v11 = vrot.slane %v1342_v4, 7  ;;  %v1355_v14 = vrot.slane %v1343_v5, 7  ;;  %v1361_v63 = vrot.slane %v1346_v26, 7  ;;  %v1363_v32 = vrot.slane %v1347_v6, 7  ;;  %v4688_v0 = vld [vmem:[#allocation6 + $0x284] ss:$16 sps:$4 sm:$0xff]  }
 0x342   :  { %v1350_v33 = vsel %vm1349_vm3, %v1348_v7, %v1332_v49  ;;  %v1352_v15 = vsel %vm1349_vm3, %v1351_v8, %v1333_v44  ;;  %v1358_v16 = vsel %vm1349_vm3, %v1357_v9, %v1336_v56  ;;  %v1360_v18 = vsel %vm1349_vm3, %v1359_v60, %v1337_v57  ;;  %v4677_v56 = vld [vmem:[#allocation6 + $0x248] ss:$16 sps:$4 sm:$0xff]   ;;  %v4682_v57 = vld [vmem:[#allocation6 + $0x264] ss:$16 sps:$4 sm:$0xff]   ;;  %v4697_v4 = vld [vmem:[#allocation6 + $0x2ac] ss:$16 sps:$4 sm:$0xff]  }
 0x343   :  { %v1354_v36 = vsel %vm1349_vm3, %v1353_v11, %v1334_v53  ;;  %v1356_v19 = vsel %vm1349_vm3, %v1355_v14, %v1335_v10  ;;  %v1362_v37 = vsel %vm1349_vm3, %v1361_v63, %v1338_v1  ;;  %v1364_v47 = vsel %vm1349_vm3, %v1363_v32, %v1339_v2  ;;  %v4679_v53 = vld [vmem:[#allocation6 + $0x24c] ss:$16 sps:$4 sm:$0xff]   ;;  %v4674_v10 = vld [vmem:[#allocation6 + $0x240] ss:$16 sps:$4 sm:$0xff]   ;;  %v4689_v3 = vld [vmem:[#allocation6 + $0x288] ss:$16 sps:$4 sm:$0xff]  }
 0x344   :  { %v1365_v20 = vpack.c.b16 %v1352_v15, %v1350_v33  ;;  %v1366_v21 = vpack.c.b16 %v1356_v19, %v1354_v36  ;;  %v1367_v55 = vpack.c.b16 %v1360_v18, %v1358_v16  ;;  %v1368_v23 = vpack.c.b16 %v1364_v47, %v1362_v37  ;;  %v4691_v1 = vld [vmem:[#allocation6 + $0x28c] ss:$16 sps:$4 sm:$0xff]   ;;  %v4686_v2 = vld [vmem:[#allocation6 + $0x280] ss:$16 sps:$4 sm:$0xff]   ;;  %v4694_v54 = vld [vmem:[#allocation6 + $0x2a4] ss:$16 sps:$4 sm:$0xff]  }
 0x345   :  { %v4692_v5 = vld [vmem:[#allocation6 + $0x2a0] ss:$16 sps:$4 sm:$0xff]   ;;  %v4695_v26 = vld [vmem:[#allocation6 + $0x2a8] ss:$16 sps:$4 sm:$0xff]   ;;  %v4700_v6 = vld [vmem:[#allocation6 + $0x2c4] ss:$16 sps:$4 sm:$0xff]  }
 0x346   :  { %v1375_v24 = vrot.slane %v1365_v20, %v5393_v34  ;;  %v1382_v25 = vrot.slane %v1366_v21, %v5393_v34  ;;  %v1389_v29 = vrot.slane %v1367_v55, %v5393_v34  ;;  %v1396_v30 = vrot.slane %v1368_v23, %v5393_v34  ;;  %v4703_v7 = vld [vmem:[#allocation6 + $0x2cc] ss:$16 sps:$4 sm:$0xff]   ;;  %v4698_v8 = vld [vmem:[#allocation6 + $0x2c0] ss:$16 sps:$4 sm:$0xff]   ;;  %v4701_v9 = vld [vmem:[#allocation6 + $0x2c8] ss:$16 sps:$4 sm:$0xff]  }
 0x347   :  { %v4706_v60 = vld [vmem:[#allocation6 + $0x2e4] ss:$16 sps:$4 sm:$0xff]   ;;  %v4709_v11 = vld [vmem:[#allocation6 + $0x2ec] ss:$16 sps:$4 sm:$0xff]   ;;  %v4704_v14 = vld [vmem:[#allocation6 + $0x2e0] ss:$16 sps:$4 sm:$0xff]  }
 0x348   :  { %v1397_v43 = vcombine.low %v1375_v24, %v1382_v25  ;;  %v1398_v31 = vcombine.low %v1389_v29, %v1396_v30  ;;  %v4707_v63 = vld [vmem:[#allocation6 + $0x2e8] ss:$16 sps:$4 sm:$0xff]   ;;  %v4712_v32 = vld [vmem:[#allocation6 + $0x304] ss:$16 sps:$4 sm:$0xff]   ;;  %v4715_v33 = vld [vmem:[#allocation6 + $0x30c] ss:$16 sps:$4 sm:$0xff]  }
 0x349   :  { %v4710_v15 = vld [vmem:[#allocation6 + $0x300] ss:$16 sps:$4 sm:$0xff]   ;;  %v4713_v16 = vld [vmem:[#allocation6 + $0x308] ss:$16 sps:$4 sm:$0xff]   ;;  %v4718_v18 = vld [vmem:[#allocation6 + $0x324] ss:$16 sps:$4 sm:$0xff]  }
 0x34a   :  { %v1405_v35 = vrot.slane %v1397_v43, %v5393_v34  ;;  %v1412_v38 = vrot.slane %v1398_v31, %v5393_v34  ;;  %v4721_v36 = vld [vmem:[#allocation6 + $0x32c] ss:$16 sps:$4 sm:$0xff]   ;;  %v4716_v19 = vld [vmem:[#allocation6 + $0x320] ss:$16 sps:$4 sm:$0xff]   ;;  %v4719_v37 = vld [vmem:[#allocation6 + $0x328] ss:$16 sps:$4 sm:$0xff]  }
 0x34b   :  { %v4724_v47 = vld [vmem:[#allocation6 + $0x344] ss:$16 sps:$4 sm:$0xff]   ;;  %v4727_v20 = vld [vmem:[#allocation6 + $0x34c] ss:$16 sps:$4 sm:$0xff]   ;;  %v4722_v21 = vld [vmem:[#allocation6 + $0x340] ss:$16 sps:$4 sm:$0xff]  }
 0x34c   :  { %v1413_v39 = vcombine.low %v1405_v35, %v1412_v38  ;;  %v4725_v55 = vld [vmem:[#allocation6 + $0x348] ss:$16 sps:$4 sm:$0xff]   ;;  %v4730_v23 = vld [vmem:[#allocation6 + $0x364] ss:$16 sps:$4 sm:$0xff]   ;;  %v4733_v24 = vld [vmem:[#allocation6 + $0x36c] ss:$16 sps:$4 sm:$0xff]  }
 0x34d   :  { %v4728_v25 = vld [vmem:[#allocation6 + $0x360] ss:$16 sps:$4 sm:$0xff]   ;;  %v4731_v29 = vld [vmem:[#allocation6 + $0x368] ss:$16 sps:$4 sm:$0xff]   ;;  %v4736_v30 = vld [vmem:[#allocation6 + $0x384] ss:$16 sps:$4 sm:$0xff]  }
 0x34e   :  { %v5436_v40 = vmax.bf16 %v5165_v27, %v1413_v39  ;;  %v4668_v27 = vld [vmem:[#allocation6 + $0x220] ss:$16 sps:$4 sm:$0xff]   ;;  %v4739_v43 = vld [vmem:[#allocation6 + $0x38c] ss:$16 sps:$4 sm:$0xff]   ;;  %v4737_v35 = vld [vmem:[#allocation6 + $0x388] ss:$16 sps:$4 sm:$0xff]  }
 0x34f   :  { %v4734_v31 = vld [vmem:[#allocation6 + $0x380] ss:$16 sps:$4 sm:$0xff]   ;;  %v4742_v38 = vld [vmem:[#allocation6 + $0x3a4] ss:$16 sps:$4 sm:$0xff]   ;;  %v4745_v39 = vld [vmem:[#allocation6 + $0x3ac] ss:$16 sps:$4 sm:$0xff]  }
 0x350   :  { %v1707_v41 = vrot.slane %v5436_v40, %v5393_v34 }
 0x352   :  { %v1715_v42 = vcombine.high %v1707_v41, %v1707_v41  ;;  %v5442_v49 = vrot.slane %v1707_v41, %v5393_v34  ;;  %v4740_v41 = vld [vmem:[#allocation6 + $0x3a0] ss:$16 sps:$4 sm:$0xff]  }
 0x354   :  { %v1737_v45 = vrot.slane %v1715_v42, %v5393_v34  ;;  %v4743_v42 = vld [vmem:[#allocation6 + $0x3a8] ss:$16 sps:$4 sm:$0xff]  }
 0x356   :  { %3069 = vmatprep.mubr.bf16.mxu0 %v1737_v45  ;;  %3233 = vmatprep.mubr.bf16.mxu1 %v1737_v45  ;;  %v1747_v44 = vcombine.high %v1737_v45, %v1737_v45  ;;  %v4748_v45 = vld [vmem:[#allocation6 + $0x3c4] ss:$16 sps:$4 sm:$0xff]  }
 0x357   :  { %3070 = vmatmul.mubr.bf16.vlgmr.msra.gmra.mrb[8].mxu0 %v5442_v49  ;;  %3234 = vmatmul.mubr.bf16.vlgmr.msra.gmra.mrb[32].mxu1 %v5442_v49 }
 0x358   :  { %3079 = vmatpush1.bf16.msra.mxu0 %v4662_v48  ;;  %3243 = vmatpush1.bf16.msra.mxu1 %v4665_v58  ;;  %v4751_v48 = vld [vmem:[#allocation6 + $0x3cc] ss:$16 sps:$4 sm:$0xff]   ;;  %v1700_v58 = vcombine.high %v5436_v40, %v5436_v40 }
 0x359   :  { %3110 = vmatprep.mubr.bf16.mxu0 %v1747_v44  ;;  %3274 = vmatprep.mubr.bf16.mxu1 %v1747_v44  ;;  %v4746_v44 = vld [vmem:[#allocation6 + $0x3c0] ss:$16 sps:$4 sm:$0xff]  }
 0x35a   :  { %3080 = vmatprep.subr.bf16.mxu0 %v4670_v46  ;;  %3244 = vmatprep.subr.bf16.mxu1 %v4673_v51  ;;  %v4749_v46 = vld [vmem:[#allocation6 + $0x3c8] ss:$16 sps:$4 sm:$0xff]   ;;  %v4754_v51 = vld [vmem:[#allocation6 + $0x3e4] ss:$16 sps:$4 sm:$0xff]  }
 0x35c   :  { %3081 = vmatpush1.bf16.msra.mxu0 %v4668_v27  ;;  %3245 = vmatpush1.bf16.msra.mxu1 %v4671_v52  ;;  %v4757_v27 = vld [vmem:[#allocation6 + $0x3ec] ss:$16 sps:$4 sm:$0xff]   ;;  %v5449_v52 = vrot.slane %v1700_v58, %v5393_v34  ;;  %v4827_v58 = vld [vmem:[#allocation6 + $0x568] ss:$16 sps:$4 sm:$0xff]  }
 0x35d   :  { %3082 = vmatprep.subr.bf16.mxu0 %v4676_v50  ;;  %3246 = vmatprep.subr.bf16.mxu1 %v4679_v53  ;;  %v4752_v50 = vld [vmem:[#allocation6 + $0x3e0] ss:$16 sps:$4 sm:$0xff]   ;;  %v4755_v53 = vld [vmem:[#allocation6 + $0x3e8] ss:$16 sps:$4 sm:$0xff]  }
 0x35e   :  { %v1716_v40 = vcombine.high %v5449_v52, %v5449_v52 }
 0x360   :  { %3083 = vmatpush1.bf16.msra.mxu0 %v4674_v10  ;;  %3247 = vmatpush1.bf16.msra.mxu1 %v4677_v56  ;;  %v4760_v10 = vld [vmem:[#allocation6 + $0x404] ss:$16 sps:$4 sm:$0xff]   ;;  %v4763_v56 = vld [vmem:[#allocation6 + $0x40c] ss:$16 sps:$4 sm:$0xff]  }
 0x361   :  { %3084 = vmatprep.subr.bf16.mxu0 %v4682_v57  ;;  %3248 = vmatprep.subr.bf16.mxu1 %v4685_v59  ;;  %v4758_v57 = vld [vmem:[#allocation6 + $0x400] ss:$16 sps:$4 sm:$0xff]   ;;  %v1745_v59 = vcombine.high %v5442_v49, %v5442_v49  ;;  %v4775_v49 = vld [vmem:[#allocation6 + $0x44c] ss:$16 sps:$4 sm:$0xff]  }
 0x364   :  { %3085 = vmatpush1.bf16.msra.mxu0 %v4680_v61  ;;  %3249 = vmatpush1.bf16.msra.mxu1 %v4683_v62  ;;  %v4761_v61 = vld [vmem:[#allocation6 + $0x408] ss:$16 sps:$4 sm:$0xff]   ;;  %v5456_v62 = vrot.slane %v1716_v40, %v5393_v34  ;;  %v4844_v40 = vld [vmem:[#allocation6 + $0x5c4] ss:$16 sps:$4 sm:$0xff]  }
 0x365   :  { %3086 = vmatprep.subr.bf16.mxu0 %v4688_v0  ;;  %3250 = vmatprep.subr.bf16.mxu1 %v4691_v1  ;;  %v4766_v0 = vld [vmem:[#allocation6 + $0x424] ss:$16 sps:$4 sm:$0xff]   ;;  %v4769_v1 = vld [vmem:[#allocation6 + $0x42c] ss:$16 sps:$4 sm:$0xff]  }
 0x368   :  { %3087 = vmatpush1.bf16.msra.mxu0 %v4686_v2  ;;  %3251 = vmatpush1.bf16.msra.mxu1 %v4689_v3  ;;  %v4764_v2 = vld [vmem:[#allocation6 + $0x420] ss:$16 sps:$4 sm:$0xff]   ;;  %v4767_v3 = vld [vmem:[#allocation6 + $0x428] ss:$16 sps:$4 sm:$0xff]  }
 0x369   :  { %3088 = vmatprep.subr.bf16.mxu0 %v4694_v54  ;;  %3252 = vmatprep.subr.bf16.mxu1 %v4697_v4  ;;  %v4772_v54 = vld [vmem:[#allocation6 + $0x444] ss:$16 sps:$4 sm:$0xff]   ;;  %v4770_v4 = vld [vmem:[#allocation6 + $0x440] ss:$16 sps:$4 sm:$0xff]  }
 0x36c   :  { %3089 = vmatpush1.bf16.msra.mxu0 %v4692_v5  ;;  %3253 = vmatpush1.bf16.msra.mxu1 %v4695_v26  ;;  %v4773_v5 = vld [vmem:[#allocation6 + $0x448] ss:$16 sps:$4 sm:$0xff]   ;;  %v4778_v26 = vld [vmem:[#allocation6 + $0x464] ss:$16 sps:$4 sm:$0xff]  }
 0x36d   :  { %3090 = vmatprep.subr.bf16.mxu0 %v4700_v6  ;;  %3254 = vmatprep.subr.bf16.mxu1 %v4703_v7  ;;  %v4781_v6 = vld [vmem:[#allocation6 + $0x46c] ss:$16 sps:$4 sm:$0xff]   ;;  %v4776_v7 = vld [vmem:[#allocation6 + $0x460] ss:$16 sps:$4 sm:$0xff]  }
 0x370   :  { %3091 = vmatpush1.bf16.msra.mxu0 %v4698_v8  ;;  %3255 = vmatpush1.bf16.msra.mxu1 %v4701_v9  ;;  %v4779_v8 = vld [vmem:[#allocation6 + $0x468] ss:$16 sps:$4 sm:$0xff]   ;;  %v4784_v9 = vld [vmem:[#allocation6 + $0x484] ss:$16 sps:$4 sm:$0xff]  }
 0x371   :  { %3092 = vmatprep.subr.bf16.mxu0 %v4706_v60  ;;  %3256 = vmatprep.subr.bf16.mxu1 %v4709_v11  ;;  %v4787_v60 = vld [vmem:[#allocation6 + $0x48c] ss:$16 sps:$4 sm:$0xff]   ;;  %v4782_v11 = vld [vmem:[#allocation6 + $0x480] ss:$16 sps:$4 sm:$0xff]  }
 0x374   :  { %3093 = vmatpush1.bf16.msra.mxu0 %v4704_v14  ;;  %3257 = vmatpush1.bf16.msra.mxu1 %v4707_v63  ;;  %v4785_v14 = vld [vmem:[#allocation6 + $0x488] ss:$16 sps:$4 sm:$0xff]   ;;  %v4790_v63 = vld [vmem:[#allocation6 + $0x4a4] ss:$16 sps:$4 sm:$0xff]  }
 0x375   :  { %3094 = vmatprep.subr.bf16.mxu0 %v4712_v32  ;;  %3258 = vmatprep.subr.bf16.mxu1 %v4715_v33  ;;  %v4793_v32 = vld [vmem:[#allocation6 + $0x4ac] ss:$16 sps:$4 sm:$0xff]   ;;  %v4788_v33 = vld [vmem:[#allocation6 + $0x4a0] ss:$16 sps:$4 sm:$0xff]  }
 0x378   :  { %3095 = vmatpush1.bf16.msra.mxu0 %v4710_v15  ;;  %3259 = vmatpush1.bf16.msra.mxu1 %v4713_v16  ;;  %v4791_v15 = vld [vmem:[#allocation6 + $0x4a8] ss:$16 sps:$4 sm:$0xff]   ;;  %v4796_v16 = vld [vmem:[#allocation6 + $0x4c4] ss:$16 sps:$4 sm:$0xff]  }
 0x379   :  { %3096 = vmatprep.subr.bf16.mxu0 %v4718_v18  ;;  %3260 = vmatprep.subr.bf16.mxu1 %v4721_v36  ;;  %v4799_v18 = vld [vmem:[#allocation6 + $0x4cc] ss:$16 sps:$4 sm:$0xff]   ;;  %v4794_v36 = vld [vmem:[#allocation6 + $0x4c0] ss:$16 sps:$4 sm:$0xff]  }
 0x37c   :  { %3097 = vmatpush1.bf16.msra.mxu0 %v4716_v19  ;;  %3261 = vmatpush1.bf16.msra.mxu1 %v4719_v37  ;;  %v4797_v19 = vld [vmem:[#allocation6 + $0x4c8] ss:$16 sps:$4 sm:$0xff]   ;;  %v4802_v37 = vld [vmem:[#allocation6 + $0x4e4] ss:$16 sps:$4 sm:$0xff]  }
 0x37d   :  { %3098 = vmatprep.subr.bf16.mxu0 %v4724_v47  ;;  %3262 = vmatprep.subr.bf16.mxu1 %v4727_v20  ;;  %v4805_v47 = vld [vmem:[#allocation6 + $0x4ec] ss:$16 sps:$4 sm:$0xff]   ;;  %v4800_v20 = vld [vmem:[#allocation6 + $0x4e0] ss:$16 sps:$4 sm:$0xff]  }
 0x380   :  { %3099 = vmatpush1.bf16.msra.mxu0 %v4722_v21  ;;  %3263 = vmatpush1.bf16.msra.mxu1 %v4725_v55  ;;  %v4803_v21 = vld [vmem:[#allocation6 + $0x4e8] ss:$16 sps:$4 sm:$0xff]   ;;  %v4808_v55 = vld [vmem:[#allocation6 + $0x504] ss:$16 sps:$4 sm:$0xff]  }
 0x381   :  { %3100 = vmatprep.subr.bf16.mxu0 %v4730_v23  ;;  %3264 = vmatprep.subr.bf16.mxu1 %v4733_v24  ;;  %v4811_v23 = vld [vmem:[#allocation6 + $0x50c] ss:$16 sps:$4 sm:$0xff]   ;;  %v4806_v24 = vld [vmem:[#allocation6 + $0x500] ss:$16 sps:$4 sm:$0xff]  }
 0x384   :  { %3101 = vmatpush1.bf16.msra.mxu0 %v4728_v25  ;;  %3265 = vmatpush1.bf16.msra.mxu1 %v4731_v29  ;;  %v4809_v25 = vld [vmem:[#allocation6 + $0x508] ss:$16 sps:$4 sm:$0xff]   ;;  %v4814_v29 = vld [vmem:[#allocation6 + $0x524] ss:$16 sps:$4 sm:$0xff]  }
 0x385   :  { %3102 = vmatprep.subr.bf16.mxu0 %v4736_v30  ;;  %3266 = vmatprep.subr.bf16.mxu1 %v4739_v43  ;;  %v4817_v30 = vld [vmem:[#allocation6 + $0x52c] ss:$16 sps:$4 sm:$0xff]   ;;  %v4812_v43 = vld [vmem:[#allocation6 + $0x520] ss:$16 sps:$4 sm:$0xff]  }
 0x388   :  { %3103 = vmatpush1.bf16.msra.mxu0 %v4734_v31  ;;  %3267 = vmatpush1.bf16.msra.mxu1 %v4737_v35  ;;  %v4815_v31 = vld [vmem:[#allocation6 + $0x528] ss:$16 sps:$4 sm:$0xff]   ;;  %v4820_v35 = vld [vmem:[#allocation6 + $0x544] ss:$16 sps:$4 sm:$0xff]  }
 0x389   :  { %3104 = vmatprep.subr.bf16.mxu0 %v4742_v38  ;;  %3268 = vmatprep.subr.bf16.mxu1 %v4745_v39  ;;  %v4823_v38 = vld [vmem:[#allocation6 + $0x54c] ss:$16 sps:$4 sm:$0xff]   ;;  %v4818_v39 = vld [vmem:[#allocation6 + $0x540] ss:$16 sps:$4 sm:$0xff]  }
 0x38c   :  { %3105 = vmatpush1.bf16.msra.mxu0 %v4740_v41  ;;  %3269 = vmatpush1.bf16.msra.mxu1 %v4743_v42  ;;  %v4821_v41 = vld [vmem:[#allocation6 + $0x548] ss:$16 sps:$4 sm:$0xff]   ;;  %v4826_v42 = vld [vmem:[#allocation6 + $0x564] ss:$16 sps:$4 sm:$0xff]  }
 0x38d   :  { %3106 = vmatprep.subr.bf16.mxu0 %v4748_v45  ;;  %3270 = vmatprep.subr.bf16.mxu1 %v4751_v48  ;;  %v4829_v45 = vld [vmem:[#allocation6 + $0x56c] ss:$16 sps:$4 sm:$0xff]   ;;  %v4824_v48 = vld [vmem:[#allocation6 + $0x560] ss:$16 sps:$4 sm:$0xff]  }
 0x390   :  { %3107 = vmatpush1.bf16.msra.mxu0 %v4746_v44  ;;  %3271 = vmatpush1.bf16.msra.mxu1 %v4749_v46  ;;  %v4832_v44 = vld [vmem:[#allocation6 + $0x584] ss:$16 sps:$4 sm:$0xff]   ;;  %v4835_v46 = vld [vmem:[#allocation6 + $0x58c] ss:$16 sps:$4 sm:$0xff]  }
 0x391   :  { %3108 = vmatprep.subr.bf16.mxu0 %v4754_v51  ;;  %3272 = vmatprep.subr.bf16.mxu1 %v4757_v27  ;;  %v4830_v51 = vld [vmem:[#allocation6 + $0x580] ss:$16 sps:$4 sm:$0xff]   ;;  %v4833_v27 = vld [vmem:[#allocation6 + $0x588] ss:$16 sps:$4 sm:$0xff]  }
 0x394   :  { %3109 = vmatpush1.bf16.msra.mxu0 %v4752_v50  ;;  %3273 = vmatpush1.bf16.msra.mxu1 %v4755_v53  ;;  %v4838_v50 = vld [vmem:[#allocation6 + $0x5a4] ss:$16 sps:$4 sm:$0xff]   ;;  %v4841_v53 = vld [vmem:[#allocation6 + $0x5ac] ss:$16 sps:$4 sm:$0xff]  }
 0x395   :  { %3119 = vmatprep.subr.bf16.mxu0 %v4760_v10  ;;  %3283 = vmatprep.subr.bf16.mxu1 %v4763_v56  ;;  %v4836_v10 = vld [vmem:[#allocation6 + $0x5a0] ss:$16 sps:$4 sm:$0xff]   ;;  %v4839_v56 = vld [vmem:[#allocation6 + $0x5a8] ss:$16 sps:$4 sm:$0xff]  }
 0x397   :  { %3111 = vmatmul.mubr.bf16.vlgmr.msra.gmra.mrb[8].mxu0 %v1745_v59  ;;  %3275 = vmatmul.mubr.bf16.vlgmr.msra.gmra.mrb[32].mxu1 %v1745_v59  ;;  %v4842_v59 = vld [vmem:[#allocation6 + $0x5c0] ss:$16 sps:$4 sm:$0xff]  }
 0x398   :  { %3120 = vmatpush1.bf16.msra.mxu0 %v4758_v57  ;;  %3151 = vmatprep.mubr.bf16.mxu0 %v5456_v62  ;;  %v4847_v57 = vld [vmem:[#allocation6 + $0x5cc] ss:$16 sps:$4 sm:$0xff]  }
 0x399   :  { %3284 = vmatpush1.bf16.msra.mxu1 %v4761_v61  ;;  %3315 = vmatprep.mubr.bf16.mxu1 %v5456_v62  ;;  %v4845_v61 = vld [vmem:[#allocation6 + $0x5c8] ss:$16 sps:$4 sm:$0xff]  }
 0x39a   :  { %3121 = vmatprep.subr.bf16.mxu0 %v4766_v0  ;;  %3285 = vmatprep.subr.bf16.mxu1 %v4769_v1  ;;  %v4850_v0 = vld [vmem:[#allocation6 + $0x5e4] ss:$16 sps:$4 sm:$0xff]   ;;  %v4853_v1 = vld [vmem:[#allocation6 + $0x5ec] ss:$16 sps:$4 sm:$0xff]  }
 0x39c   :  { %3122 = vmatpush1.bf16.msra.mxu0 %v4764_v2  ;;  %v4848_v2 = vld [vmem:[#allocation6 + $0x5e0] ss:$16 sps:$4 sm:$0xff]  }
 0x39d   :  { %3286 = vmatpush1.bf16.msra.mxu1 %v4767_v3  ;;  %3123 = vmatprep.subr.bf16.mxu0 %v4772_v54  ;;  %v4851_v3 = vld [vmem:[#allocation6 + $0x5e8] ss:$16 sps:$4 sm:$0xff]   ;;  %v4856_v54 = vld [vmem:[#allocation6 + $0x604] ss:$16 sps:$4 sm:$0xff]  }
 0x39e   :  { %3287 = vmatprep.subr.bf16.mxu1 %v4775_v49  ;;  %v4859_v49 = vld [vmem:[#allocation6 + $0x60c] ss:$16 sps:$4 sm:$0xff]  }
 0x3a0   :  { %3124 = vmatpush1.bf16.msra.mxu0 %v4770_v4  ;;  %v4854_v4 = vld [vmem:[#allocation6 + $0x600] ss:$16 sps:$4 sm:$0xff]  }
 0x3a1   :  { %3288 = vmatpush1.bf16.msra.mxu1 %v4773_v5  ;;  %3125 = vmatprep.subr.bf16.mxu0 %v4778_v26  ;;  %v5462_v5 = vrot.slane %v5449_v52, %v5393_v34  ;;  %v4857_v26 = vld [vmem:[#allocation6 + $0x608] ss:$16 sps:$4 sm:$0xff]   ;;  %v4871_v34 = vld [vmem:[#allocation6 + $0x64c] ss:$16 sps:$4 sm:$0xff]   ;;  %v4866_v52 = vld [vmem:[#allocation6 + $0x640] ss:$16 sps:$4 sm:$0xff]  }
 0x3a2   :  { %3289 = vmatprep.subr.bf16.mxu1 %v4781_v6  ;;  %v4862_v6 = vld [vmem:[#allocation6 + $0x624] ss:$16 sps:$4 sm:$0xff]  }
 0x3a4   :  { %3126 = vmatpush1.bf16.msra.mxu0 %v4776_v7  ;;  %v1748_v7 = vcombine.high %v5456_v62, %v5456_v62  ;;  %v4877_v62 = vld [vmem:[#allocation6 + $0x66c] ss:$16 sps:$4 sm:$0xff]  }
 0x3a5   :  { %3290 = vmatpush1.bf16.msra.mxu1 %v4779_v8  ;;  %3127 = vmatprep.subr.bf16.mxu0 %v4784_v9  ;;  %v4865_v8 = vld [vmem:[#allocation6 + $0x62c] ss:$16 sps:$4 sm:$0xff]   ;;  %v4860_v9 = vld [vmem:[#allocation6 + $0x620] ss:$16 sps:$4 sm:$0xff]  }
 0x3a6   :  { %3291 = vmatprep.subr.bf16.mxu1 %v4787_v60  ;;  %v4863_v60 = vld [vmem:[#allocation6 + $0x628] ss:$16 sps:$4 sm:$0xff]  }
 0x3a8   :  { %3128 = vmatpush1.bf16.msra.mxu0 %v4782_v11  ;;  %v4868_v11 = vld [vmem:[#allocation6 + $0x644] ss:$16 sps:$4 sm:$0xff]  }
 0x3a9   :  { %3292 = vmatpush1.bf16.msra.mxu1 %v4785_v14  ;;  %3129 = vmatprep.subr.bf16.mxu0 %v4790_v63  ;;  %v4869_v14 = vld [vmem:[#allocation6 + $0x648] ss:$16 sps:$4 sm:$0xff]   ;;  %v4874_v63 = vld [vmem:[#allocation6 + $0x664] ss:$16 sps:$4 sm:$0xff]  }
 0x3aa   :  { %3293 = vmatprep.subr.bf16.mxu1 %v4793_v32  ;;  %v4872_v32 = vld [vmem:[#allocation6 + $0x660] ss:$16 sps:$4 sm:$0xff]  }
 0x3ac   :  { %3130 = vmatpush1.bf16.msra.mxu0 %v4788_v33  ;;  %v4875_v33 = vld [vmem:[#allocation6 + $0x668] ss:$16 sps:$4 sm:$0xff]  }
 0x3ad   :  { %3294 = vmatpush1.bf16.msra.mxu1 %v4791_v15  ;;  %3131 = vmatprep.subr.bf16.mxu0 %v4796_v16  ;;  %v4880_v15 = vld [vmem:[#allocation6 + $0x684] ss:$16 sps:$4 sm:$0xff]   ;;  %v4883_v16 = vld [vmem:[#allocation6 + $0x68c] ss:$16 sps:$4 sm:$0xff]  }
 0x3ae   :  { %3295 = vmatprep.subr.bf16.mxu1 %v4799_v18  ;;  %v4878_v18 = vld [vmem:[#allocation6 + $0x680] ss:$16 sps:$4 sm:$0xff]  }
 0x3b0   :  { %3132 = vmatpush1.bf16.msra.mxu0 %v4794_v36  ;;  %v4881_v36 = vld [vmem:[#allocation6 + $0x688] ss:$16 sps:$4 sm:$0xff]  }
 0x3b1   :  { %3296 = vmatpush1.bf16.msra.mxu1 %v4797_v19  ;;  %3133 = vmatprep.subr.bf16.mxu0 %v4802_v37  ;;  %v4886_v19 = vld [vmem:[#allocation6 + $0x6a4] ss:$16 sps:$4 sm:$0xff]   ;;  %v4889_v37 = vld [vmem:[#allocation6 + $0x6ac] ss:$16 sps:$4 sm:$0xff]  }
 0x3b2   :  { %3297 = vmatprep.subr.bf16.mxu1 %v4805_v47  ;;  %v4884_v47 = vld [vmem:[#allocation6 + $0x6a0] ss:$16 sps:$4 sm:$0xff]  }
 0x3b4   :  { %3134 = vmatpush1.bf16.msra.mxu0 %v4800_v20  ;;  %v4887_v20 = vld [vmem:[#allocation6 + $0x6a8] ss:$16 sps:$4 sm:$0xff]  }
 0x3b5   :  { %3298 = vmatpush1.bf16.msra.mxu1 %v4803_v21  ;;  %3135 = vmatprep.subr.bf16.mxu0 %v4808_v55  ;;  %v4892_v21 = vld [vmem:[#allocation6 + $0x6c4] ss:$16 sps:$4 sm:$0xff]   ;;  %v4895_v55 = vld [vmem:[#allocation6 + $0x6cc] ss:$16 sps:$4 sm:$0xff]  }
 0x3b6   :  { %3299 = vmatprep.subr.bf16.mxu1 %v4811_v23  ;;  %v4890_v23 = vld [vmem:[#allocation6 + $0x6c0] ss:$16 sps:$4 sm:$0xff]  }
 0x3b8   :  { %3136 = vmatpush1.bf16.msra.mxu0 %v4806_v24  ;;  %v4893_v24 = vld [vmem:[#allocation6 + $0x6c8] ss:$16 sps:$4 sm:$0xff]  }
 0x3b9   :  { %3300 = vmatpush1.bf16.msra.mxu1 %v4809_v25  ;;  %3137 = vmatprep.subr.bf16.mxu0 %v4814_v29  ;;  %v4898_v25 = vld [vmem:[#allocation6 + $0x6e4] ss:$16 sps:$4 sm:$0xff]   ;;  %v4901_v29 = vld [vmem:[#allocation6 + $0x6ec] ss:$16 sps:$4 sm:$0xff]  }
 0x3ba   :  { %3301 = vmatprep.subr.bf16.mxu1 %v4817_v30  ;;  %v4896_v30 = vld [vmem:[#allocation6 + $0x6e0] ss:$16 sps:$4 sm:$0xff]  }
 0x3bc   :  { %3138 = vmatpush1.bf16.msra.mxu0 %v4812_v43  ;;  %v4899_v43 = vld [vmem:[#allocation6 + $0x6e8] ss:$16 sps:$4 sm:$0xff]  }
 0x3bd   :  { %3302 = vmatpush1.bf16.msra.mxu1 %v4815_v31  ;;  %3139 = vmatprep.subr.bf16.mxu0 %v4820_v35  ;;  %v4904_v31 = vld [vmem:[#allocation6 + $0x704] ss:$16 sps:$4 sm:$0xff]   ;;  %v4907_v35 = vld [vmem:[#allocation6 + $0x70c] ss:$16 sps:$4 sm:$0xff]  }
 0x3be   :  { %3303 = vmatprep.subr.bf16.mxu1 %v4823_v38  ;;  %v4902_v38 = vld [vmem:[#allocation6 + $0x700] ss:$16 sps:$4 sm:$0xff]  }
 0x3c0   :  { %3140 = vmatpush1.bf16.msra.mxu0 %v4818_v39  ;;  %v4905_v39 = vld [vmem:[#allocation6 + $0x708] ss:$16 sps:$4 sm:$0xff]  }
 0x3c1   :  { %3304 = vmatpush1.bf16.msra.mxu1 %v4821_v41  ;;  %3141 = vmatprep.subr.bf16.mxu0 %v4826_v42  ;;  %v4910_v41 = vld [vmem:[#allocation6 + $0x724] ss:$16 sps:$4 sm:$0xff]   ;;  %v4913_v42 = vld [vmem:[#allocation6 + $0x72c] ss:$16 sps:$4 sm:$0xff]  }
 0x3c2   :  { %3305 = vmatprep.subr.bf16.mxu1 %v4829_v45  ;;  %v4908_v45 = vld [vmem:[#allocation6 + $0x720] ss:$16 sps:$4 sm:$0xff]  }
 0x3c4   :  { %3142 = vmatpush1.bf16.msra.mxu0 %v4824_v48  ;;  %v4911_v48 = vld [vmem:[#allocation6 + $0x728] ss:$16 sps:$4 sm:$0xff]  }
 0x3c5   :  { %3306 = vmatpush1.bf16.msra.mxu1 %v4827_v58  ;;  %3143 = vmatprep.subr.bf16.mxu0 %v4832_v44  ;;  %v4916_v58 = vld [vmem:[#allocation6 + $0x744] ss:$16 sps:$4 sm:$0xff]   ;;  %v4919_v44 = vld [vmem:[#allocation6 + $0x74c] ss:$16 sps:$4 sm:$0xff]  }
 0x3c6   :  { %3307 = vmatprep.subr.bf16.mxu1 %v4835_v46  ;;  %v4914_v46 = vld [vmem:[#allocation6 + $0x740] ss:$16 sps:$4 sm:$0xff]  }
 0x3c8   :  { %3144 = vmatpush1.bf16.msra.mxu0 %v4830_v51  ;;  %v4917_v51 = vld [vmem:[#allocation6 + $0x748] ss:$16 sps:$4 sm:$0xff]  }
 0x3c9   :  { %3308 = vmatpush1.bf16.msra.mxu1 %v4833_v27  ;;  %3145 = vmatprep.subr.bf16.mxu0 %v4838_v50  ;;  %v4922_v27 = vld [vmem:[#allocation6 + $0x764] ss:$16 sps:$4 sm:$0xff]   ;;  %v4925_v50 = vld [vmem:[#allocation6 + $0x76c] ss:$16 sps:$4 sm:$0xff]  }
 0x3ca   :  { %3309 = vmatprep.subr.bf16.mxu1 %v4841_v53  ;;  %v4920_v53 = vld [vmem:[#allocation6 + $0x760] ss:$16 sps:$4 sm:$0xff]  }
 0x3cc   :  { %3146 = vmatpush1.bf16.msra.mxu0 %v4836_v10  ;;  %v4923_v10 = vld [vmem:[#allocation6 + $0x768] ss:$16 sps:$4 sm:$0xff]  }
 0x3cd   :  { %3310 = vmatpush1.bf16.msra.mxu1 %v4839_v56  ;;  %3147 = vmatprep.subr.bf16.mxu0 %v4844_v40  ;;  %v4928_v56 = vld [vmem:[#allocation6 + $0x784] ss:$16 sps:$4 sm:$0xff]   ;;  %v4931_v40 = vld [vmem:[#allocation6 + $0x78c] ss:$16 sps:$4 sm:$0xff]  }
 0x3ce   :  { %3311 = vmatprep.subr.bf16.mxu1 %v4847_v57  ;;  %v4926_v57 = vld [vmem:[#allocation6 + $0x780] ss:$16 sps:$4 sm:$0xff]  }
 0x3d0   :  { %3148 = vmatpush1.bf16.msra.mxu0 %v4842_v59  ;;  %v4929_v59 = vld [vmem:[#allocation6 + $0x788] ss:$16 sps:$4 sm:$0xff]  }
 0x3d1   :  { %3312 = vmatpush1.bf16.msra.mxu1 %v4845_v61  ;;  %3149 = vmatprep.subr.bf16.mxu0 %v4850_v0  ;;  %v4934_v61 = vld [vmem:[#allocation6 + $0x7a4] ss:$16 sps:$4 sm:$0xff]   ;;  %v4937_v0 = vld [vmem:[#allocation6 + $0x7ac] ss:$16 sps:$4 sm:$0xff]  }
 0x3d2   :  { %3313 = vmatprep.subr.bf16.mxu1 %v4853_v1  ;;  %v4932_v1 = vld [vmem:[#allocation6 + $0x7a0] ss:$16 sps:$4 sm:$0xff]  }
 0x3d4   :  { %3150 = vmatpush1.bf16.msra.mxu0 %v4848_v2  ;;  %v4935_v2 = vld [vmem:[#allocation6 + $0x7a8] ss:$16 sps:$4 sm:$0xff]  }
 0x3d5   :  { %3314 = vmatpush1.bf16.msra.mxu1 %v4851_v3  ;;  %3160 = vmatprep.subr.bf16.mxu0 %v4856_v54  ;;  %v4940_v3 = vld [vmem:[#allocation6 + $0x7c4] ss:$16 sps:$4 sm:$0xff]   ;;  %v4943_v54 = vld [vmem:[#allocation6 + $0x7cc] ss:$16 sps:$4 sm:$0xff]  }
 0x3d6   :  { %3324 = vmatprep.subr.bf16.mxu1 %v4859_v49  ;;  %v4938_v49 = vld [vmem:[#allocation6 + $0x7c0] ss:$16 sps:$4 sm:$0xff]  }
 0x3d7   :  { %3152 = vmatmul.mubr.bf16.vlgmr.msra.gmra.mrb[8].mxu0 %v5462_v5 }
 0x3d8   :  { %3316 = vmatmul.mubr.bf16.vlgmr.msra.gmra.mrb[32].mxu1 %v5462_v5  ;;  %3161 = vmatpush1.bf16.msra.mxu0 %v4854_v4  ;;  %v4941_v4 = vld [vmem:[#allocation6 + $0x7c8] ss:$16 sps:$4 sm:$0xff]  }
 0x3d9   :  { %3192 = vmatprep.mubr.bf16.mxu0 %v1748_v7  ;;  %3325 = vmatpush1.bf16.msra.mxu1 %v4857_v26  ;;  %v4946_v26 = vld [vmem:[#allocation6 + $0x7e4] ss:$16 sps:$4 sm:$0xff]  }
 0x3da   :  { %3356 = vmatprep.mubr.bf16.mxu1 %v1748_v7  ;;  %3162 = vmatprep.subr.bf16.mxu0 %v4862_v6  ;;  %v4949_v6 = vld [vmem:[#allocation6 + $0x7ec] ss:$16 sps:$4 sm:$0xff]   ;;  %v4944_v7 = vld [vmem:[#allocation6 + $0x7e0] ss:$16 sps:$4 sm:$0xff]  }
 0x3db   :  { %3326 = vmatprep.subr.bf16.mxu1 %v4865_v8  ;;  %v4947_v8 = vld [vmem:[#allocation6 + $0x7e8] ss:$16 sps:$4 sm:$0xff]  }
 0x3dc   :  { %3163 = vmatpush1.bf16.msra.mxu0 %v4860_v9  ;;  %v4952_v9 = vld [vmem:[#allocation8 + $0x4] ss:$8 sps:$4 sm:$0xff]  }
 0x3dd   :  { %3327 = vmatpush1.bf16.msra.mxu1 %v4863_v60  ;;  %3164 = vmatprep.subr.bf16.mxu0 %v4868_v11  ;;  %v4950_v60 = vld [vmem:[#allocation8] ss:$8 sps:$4 sm:$0xff]   ;;  %v1746_v11 = vcombine.high %v5462_v5, %v5462_v5  ;;  %v4967_v5 = vld [vmem:[#allocation8 + $0x54] ss:$8 sps:$4 sm:$0xff]  }
 0x3de   :  { %3328 = vmatprep.subr.bf16.mxu1 %v4871_v34  ;;  %v4955_v34 = vld [vmem:[#allocation8 + $0x14] ss:$8 sps:$4 sm:$0xff]  }
 0x3e0   :  { %3165 = vmatpush1.bf16.msra.mxu0 %v4866_v52  ;;  %v4953_v52 = vld [vmem:[#allocation8 + $0x10] ss:$8 sps:$4 sm:$0xff]  }
 0x3e1   :  { %3329 = vmatpush1.bf16.msra.mxu1 %v4869_v14  ;;  %3166 = vmatprep.subr.bf16.mxu0 %v4874_v63  ;;  %v4958_v14 = vld [vmem:[#allocation8 + $0x24] ss:$8 sps:$4 sm:$0xff]   ;;  %v4956_v63 = vld [vmem:[#allocation8 + $0x20] ss:$8 sps:$4 sm:$0xff]  }
 0x3e2   :  { %3330 = vmatprep.subr.bf16.mxu1 %v4877_v62  ;;  %v4961_v62 = vld [vmem:[#allocation8 + $0x34] ss:$8 sps:$4 sm:$0xff]  }
 0x3e4   :  { %3167 = vmatpush1.bf16.msra.mxu0 %v4872_v32  ;;  %v4959_v32 = vld [vmem:[#allocation8 + $0x30] ss:$8 sps:$4 sm:$0xff]  }
 0x3e5   :  { %3331 = vmatpush1.bf16.msra.mxu1 %v4875_v33  ;;  %3168 = vmatprep.subr.bf16.mxu0 %v4880_v15  ;;  %v4964_v33 = vld [vmem:[#allocation8 + $0x44] ss:$8 sps:$4 sm:$0xff]   ;;  %v4962_v15 = vld [vmem:[#allocation8 + $0x40] ss:$8 sps:$4 sm:$0xff]  }
 0x3e6   :  { %3332 = vmatprep.subr.bf16.mxu1 %v4883_v16  ;;  %v4965_v16 = vld [vmem:[#allocation8 + $0x50] ss:$8 sps:$4 sm:$0xff]  }
 0x3e8   :  { %3169 = vmatpush1.bf16.msra.mxu0 %v4878_v18  ;;  %v4970_v18 = vld [vmem:[#allocation8 + $0x64] ss:$8 sps:$4 sm:$0xff]  }
 0x3e9   :  { %3333 = vmatpush1.bf16.msra.mxu1 %v4881_v36  ;;  %3170 = vmatprep.subr.bf16.mxu0 %v4886_v19  ;;  %v4968_v36 = vld [vmem:[#allocation8 + $0x60] ss:$8 sps:$4 sm:$0xff]   ;;  %v4973_v19 = vld [vmem:[#allocation8 + $0x74] ss:$8 sps:$4 sm:$0xff]  }
 0x3ea   :  { %3334 = vmatprep.subr.bf16.mxu1 %v4889_v37  ;;  %v4971_v37 = vld [vmem:[#allocation8 + $0x70] ss:$8 sps:$4 sm:$0xff]  }
 0x3ec   :  { %3171 = vmatpush1.bf16.msra.mxu0 %v4884_v47  ;;  %v4976_v47 = vld [vmem:[#allocation8 + $0x84] ss:$8 sps:$4 sm:$0xff]  }
 0x3ed   :  { %3335 = vmatpush1.bf16.msra.mxu1 %v4887_v20  ;;  %3172 = vmatprep.subr.bf16.mxu0 %v4892_v21  ;;  %v4974_v20 = vld [vmem:[#allocation8 + $0x80] ss:$8 sps:$4 sm:$0xff]   ;;  %v4979_v21 = vld [vmem:[#allocation8 + $0x94] ss:$8 sps:$4 sm:$0xff]  }
 0x3ee   :  { %3336 = vmatprep.subr.bf16.mxu1 %v4895_v55  ;;  %v4977_v55 = vld [vmem:[#allocation8 + $0x90] ss:$8 sps:$4 sm:$0xff]  }
 0x3f0   :  { %3173 = vmatpush1.bf16.msra.mxu0 %v4890_v23  ;;  %v4982_v23 = vld [vmem:[#allocation8 + $0xa4] ss:$8 sps:$4 sm:$0xff]  }
 0x3f1   :  { %3337 = vmatpush1.bf16.msra.mxu1 %v4893_v24  ;;  %3174 = vmatprep.subr.bf16.mxu0 %v4898_v25  ;;  %v4980_v24 = vld [vmem:[#allocation8 + $0xa0] ss:$8 sps:$4 sm:$0xff]   ;;  %v4985_v25 = vld [vmem:[#allocation8 + $0xb4] ss:$8 sps:$4 sm:$0xff]  }
 0x3f2   :  { %3338 = vmatprep.subr.bf16.mxu1 %v4901_v29  ;;  %v4983_v29 = vld [vmem:[#allocation8 + $0xb0] ss:$8 sps:$4 sm:$0xff]  }
 0x3f4   :  { %3175 = vmatpush1.bf16.msra.mxu0 %v4896_v30  ;;  %v4988_v30 = vld [vmem:[#allocation8 + $0xc4] ss:$8 sps:$4 sm:$0xff]  }
 0x3f5   :  { %3339 = vmatpush1.bf16.msra.mxu1 %v4899_v43  ;;  %3176 = vmatprep.subr.bf16.mxu0 %v4904_v31  ;;  %v4986_v43 = vld [vmem:[#allocation8 + $0xc0] ss:$8 sps:$4 sm:$0xff]   ;;  %v4991_v31 = vld [vmem:[#allocation8 + $0xd4] ss:$8 sps:$4 sm:$0xff]  }
 0x3f6   :  { %3340 = vmatprep.subr.bf16.mxu1 %v4907_v35  ;;  %v4989_v35 = vld [vmem:[#allocation8 + $0xd0] ss:$8 sps:$4 sm:$0xff]  }
 0x3f8   :  { %3177 = vmatpush1.bf16.msra.mxu0 %v4902_v38  ;;  %v4994_v38 = vld [vmem:[#allocation8 + $0xe4] ss:$8 sps:$4 sm:$0xff]  }
 0x3f9   :  { %3341 = vmatpush1.bf16.msra.mxu1 %v4905_v39  ;;  %3178 = vmatprep.subr.bf16.mxu0 %v4910_v41  ;;  %v4992_v39 = vld [vmem:[#allocation8 + $0xe0] ss:$8 sps:$4 sm:$0xff]   ;;  %v4997_v41 = vld [vmem:[#allocation8 + $0xf4] ss:$8 sps:$4 sm:$0xff]  }
 0x3fa   :  { %3342 = vmatprep.subr.bf16.mxu1 %v4913_v42  ;;  %v4995_v42 = vld [vmem:[#allocation8 + $0xf0] ss:$8 sps:$4 sm:$0xff]  }
 0x3fc   :  { %3179 = vmatpush1.bf16.msra.mxu0 %v4908_v45  ;;  %v5000_v45 = vld [vmem:[#allocation8 + $0x104] ss:$8 sps:$4 sm:$0xff]  }
 0x3fd   :  { %3343 = vmatpush1.bf16.msra.mxu1 %v4911_v48  ;;  %3180 = vmatprep.subr.bf16.mxu0 %v4916_v58  ;;  %v5046_v48 = vld [vmem:[%s5567_s11 + $0x40] sm:$0xff]  }
 0x3fe   :  { %3344 = vmatprep.subr.bf16.mxu1 %v4919_v44  ;;  %v5047_v58 = vld [vmem:[%s5567_s11] sm:$0xff]   ;;  %v5048_v44 = vld [vmem:[%s5567_s11 + $0x48] sm:$0xff]  }
 0x400   :  { %3181 = vmatpush1.bf16.msra.mxu0 %v4914_v46  ;;  %v5049_v46 = vld [vmem:[%s5567_s11 + $0x8] sm:$0xff]  }
 0x401   :  { %3345 = vmatpush1.bf16.msra.mxu1 %v4917_v51  ;;  %3182 = vmatprep.subr.bf16.mxu0 %v4922_v27  ;;  %v5050_v51 = vld [vmem:[%s5567_s11 + $0x50] sm:$0xff]  }
 0x402   :  { %3346 = vmatprep.subr.bf16.mxu1 %v4925_v50  ;;  %v5051_v27 = vld [vmem:[%s5567_s11 + $0x10] sm:$0xff]   ;;  %v5052_v50 = vld [vmem:[%s5567_s11 + $0x58] sm:$0xff]  }
 0x404   :  { %3183 = vmatpush1.bf16.msra.mxu0 %v4920_v53  ;;  %v5053_v53 = vld [vmem:[%s5567_s11 + $0x18] sm:$0xff]  }
 0x405   :  { %3347 = vmatpush1.bf16.msra.mxu1 %v4923_v10  ;;  %3184 = vmatprep.subr.bf16.mxu0 %v4928_v56  ;;  %v5054_v10 = vld [vmem:[%s5567_s11 + $0x60] sm:$0xff]  }
 0x406   :  { %3348 = vmatprep.subr.bf16.mxu1 %v4931_v40  ;;  %v5055_v56 = vld [vmem:[%s5567_s11 + $0x20] sm:$0xff]   ;;  %v5056_v40 = vld [vmem:[%s5567_s11 + $0x68] sm:$0xff]  }
 0x408   :  { %3185 = vmatpush1.bf16.msra.mxu0 %v4926_v57  ;;  %v5057_v57 = vld [vmem:[%s5567_s11 + $0x28] sm:$0xff]  }
 0x409   :  { %3349 = vmatpush1.bf16.msra.mxu1 %v4929_v59  ;;  %3186 = vmatprep.subr.bf16.mxu0 %v4934_v61  ;;  %v5509_v59 = vld [vmem:[%s5564_s8] sm:$0xf] }
 0x40a   :  { %3350 = vmatprep.subr.bf16.mxu1 %v4937_v0  ;;  %v1682_v61 = vrot.slane %v5509_v59, %v5333_v22  ;;  %v1686_v0 = vrot.slane %v5509_v59, %v5342_v28 }
 0x40c   :  { %3187 = vmatpush1.bf16.msra.mxu0 %v4932_v1  ;;  %v1694_v1 = vrot.slane %v5509_v59, %v361_v13 }
 0x40d   :  { %3351 = vmatpush1.bf16.msra.mxu1 %v4935_v2  ;;  %3188 = vmatprep.subr.bf16.mxu0 %v4940_v3 }
 0x40e   :  { %3352 = vmatprep.subr.bf16.mxu1 %v4943_v54 }
 0x410   :  { %3189 = vmatpush1.bf16.msra.mxu0 %v4938_v49 }
 0x411   :  { %3353 = vmatpush1.bf16.msra.mxu1 %v4941_v4  ;;  %3190 = vmatprep.subr.bf16.mxu0 %v4946_v26 }
 0x412   :  { %3354 = vmatprep.subr.bf16.mxu1 %v4949_v6 }
 0x414   :  { %3191 = vmatpush1.bf16.msra.mxu0 %v4944_v7 }
 0x415   :  { %3355 = vmatpush1.bf16.msra.mxu1 %v4947_v8  ;;  %3769 = vmatprep.subr.bf16.mxu0 %v4952_v9 }
 0x416   :  { %4472 = vmatprep.subr.bf16.mxu1 %v5046_v48  ;;  %v1690_v48 = vrot.slane %v5509_v59, %v357_v12  ;;  %v5059_v12 = vld [vmem:[%s5567_s11 + $0x30] sm:$0xff]  }
 0x417   :  { %3193 = vmatmul.mubr.bf16.vlgmr.msra.gmra.mrb[8].mxu0 %v1746_v11 }
 0x418   :  { %3357 = vmatmul.mubr.bf16.vlgmr.msra.gmra.mrb[32].mxu1 %v1746_v11  ;;  %3770 = vmatpush1.bf16.msra.mxu0 %v4950_v60 }
 0x419   :  { %3771 = vmatprep.subr.bf16.mxu0 %v4955_v34  ;;  %4473 = vmatpush3.bf16.msra.mxu1 %v5047_v58  ;;  %v5042_v58 = vld [vmem:[#allocation8 + $0x1e4] ss:$8 sps:$4 sm:$0xff]  }
 0x41a   :  { %4474 = vmatprep.subr.bf16.mxu1 %v5048_v44  ;;  %v5040_v44 = vld [vmem:[#allocation8 + $0x1e0] ss:$8 sps:$4 sm:$0xff]  }
 0x41c   :  { %3772 = vmatpush1.bf16.msra.mxu0 %v4953_v52 }
 0x41d   :  { %3773 = vmatprep.subr.bf16.mxu0 %v4958_v14  ;;  %4475 = vmatpush3.bf16.msra.mxu1 %v5049_v46 }
 0x41e   :  { %4476 = vmatprep.subr.bf16.mxu1 %v5050_v51  ;;  %v5045_v51 = vld [vmem:[#allocation8 + $0x1f4] ss:$8 sps:$4 sm:$0xff]  }
 0x420   :  { %3774 = vmatpush1.bf16.msra.mxu0 %v4956_v63  ;;  %v4998_v63 = vld [vmem:[#allocation8 + $0x100] ss:$8 sps:$4 sm:$0xff]  }
 0x421   :  { %3775 = vmatprep.subr.bf16.mxu0 %v4961_v62  ;;  %4477 = vmatpush3.bf16.msra.mxu1 %v5051_v27  ;;  %v5043_v27 = vld [vmem:[#allocation8 + $0x1f0] ss:$8 sps:$4 sm:$0xff]  }
 0x422   :  { %4478 = vmatprep.subr.bf16.mxu1 %v5052_v50 }
 0x424   :  { %3776 = vmatpush1.bf16.msra.mxu0 %v4959_v32  ;;  %v5003_v32 = vld [vmem:[#allocation8 + $0x114] ss:$8 sps:$4 sm:$0xff]  }
 0x425   :  { %3777 = vmatprep.subr.bf16.mxu0 %v4964_v33  ;;  %4479 = vmatpush3.bf16.msra.mxu1 %v5053_v53  ;;  %v5001_v33 = vld [vmem:[#allocation8 + $0x110] ss:$8 sps:$4 sm:$0xff]  }
 0x426   :  { %4480 = vmatprep.subr.bf16.mxu1 %v5054_v10  ;;  %v5060_v10 = vld [vmem:[%s5567_s11 + $0x78] sm:$0xff]  }
 0x428   :  { %3778 = vmatpush1.bf16.msra.mxu0 %v4962_v15  ;;  %v5006_v15 = vld [vmem:[#allocation8 + $0x124] ss:$8 sps:$4 sm:$0xff]  }
 0x429   :  { %3779 = vmatprep.subr.bf16.mxu0 %v4967_v5  ;;  %4481 = vmatpush3.bf16.msra.mxu1 %v5055_v56  ;;  %v5004_v5 = vld [vmem:[#allocation8 + $0x120] ss:$8 sps:$4 sm:$0xff]   ;;  %v5061_v56 = vld [vmem:[%s5567_s11 + $0x38] sm:$0xff]  }
 0x42a   :  { %4482 = vmatprep.subr.bf16.mxu1 %v5056_v40  ;;  %v3437_v40 = vld [vmem:[%s5566_s10] sm:$0x3]  ;;  %s5168_s10 = smov [#allocation9]  }
 0x42b   :  { %v3446_v59 = vrot.slane %v3437_v40, %v5342_v28  ;;  %s4038_s17 = sshll.u32 %s5168_s10, 4  ;;  %s4039_s17 = int_to_ptr.vmem [resolvable:$true] %s4038_s17 }
 0x42c   :  { %3780 = vmatpush1.bf16.msra.mxu0 %v4965_v16  ;;  %v5009_v16 = vld [vmem:[#allocation8 + $0x134] ss:$8 sps:$4 sm:$0xff]   ;;  %s5128_s18 = scalar_lea.vmem %s4039_s17, 32  ;;  %p5133_p11 = scmp.lt.s32.totalorder %s4039_s17, %s4039_s17 }
 0x42d   :  { %3781 = vmatprep.subr.bf16.mxu0 %v4970_v18  ;;  %4483 = vmatpush3.bf16.msra.mxu1 %v5057_v57  ;;  %v5007_v18 = vld [vmem:[#allocation8 + $0x130] ss:$8 sps:$4 sm:$0xff]   ;;  %v3442_v57 = vrot.slane %v3437_v40, %v5333_v22  ;;  %p5129_p10 = scmp.ne.s32.totalorder %s4039_s17, %s5128_s18  ;;  %p5134_p12 = scmp.lt.s32.totalorder %s5128_s18, %s5128_s18 }
 0x42e   :  { %4484 = vmatprep.subr.bf16.mxu1 %v5058_v17 }
 0x42f   :  { %p5135_p13 = por %p5134_p12, %p5133_p11 }
 0x430   :  { %3782 = vmatpush1.bf16.msra.mxu0 %v4968_v36  ;;  %v5012_v36 = vld [vmem:[#allocation8 + $0x144] ss:$8 sps:$4 sm:$0xff]  }
 0x431   :  { %3783 = vmatprep.subr.bf16.mxu0 %v4973_v19  ;;  %v5010_v19 = vld [vmem:[#allocation8 + $0x140] ss:$8 sps:$4 sm:$0xff]   ;;  %4485 = vmatpush3.bf16.msra.mxu1 %v5059_v12  ;;  %p5136_p0 = pnand %p5135_p13, %p5129_p10 }
 0x432   :  { %4486 = vmatprep.subr.bf16.mxu1 %v5060_v10 }
 0x434   :  { %3784 = vmatpush1.bf16.msra.mxu0 %v4971_v37  ;;  %v5015_v37 = vld [vmem:[#allocation8 + $0x154] ss:$8 sps:$4 sm:$0xff]  }
 0x435   :  { %3785 = vmatprep.subr.bf16.mxu0 %v4976_v47  ;;  %v5013_v47 = vld [vmem:[#allocation8 + $0x150] ss:$8 sps:$4 sm:$0xff]   ;;  %4487 = vmatpush3.bf16.msra.mxu1 %v5061_v56 }
 0x438   :  { %3786 = vmatpush1.bf16.msra.mxu0 %v4974_v20  ;;  %v5018_v20 = vld [vmem:[#allocation8 + $0x164] ss:$8 sps:$4 sm:$0xff]  }
 0x439   :  { %3787 = vmatprep.subr.bf16.mxu0 %v4979_v21  ;;  %v5016_v21 = vld [vmem:[#allocation8 + $0x160] ss:$8 sps:$4 sm:$0xff]  }
 0x43c   :  { %3788 = vmatpush1.bf16.msra.mxu0 %v4977_v55  ;;  %v5021_v55 = vld [vmem:[#allocation8 + $0x174] ss:$8 sps:$4 sm:$0xff]  }
 0x43d   :  { %3789 = vmatprep.subr.bf16.mxu0 %v4982_v23  ;;  %v5019_v23 = vld [vmem:[#allocation8 + $0x170] ss:$8 sps:$4 sm:$0xff]  }
 0x440   :  { %3790 = vmatpush1.bf16.msra.mxu0 %v4980_v24  ;;  %v5024_v24 = vld [vmem:[#allocation8 + $0x184] ss:$8 sps:$4 sm:$0xff]  }
 0x441   :  { %3791 = vmatprep.subr.bf16.mxu0 %v4985_v25  ;;  %v5022_v25 = vld [vmem:[#allocation8 + $0x180] ss:$8 sps:$4 sm:$0xff]  }
 0x444   :  { %3792 = vmatpush1.bf16.msra.mxu0 %v4983_v29  ;;  %v5027_v29 = vld [vmem:[#allocation8 + $0x194] ss:$8 sps:$4 sm:$0xff]  }
 0x445   :  { %3793 = vmatprep.subr.bf16.mxu0 %v4988_v30  ;;  %v5025_v30 = vld [vmem:[#allocation8 + $0x190] ss:$8 sps:$4 sm:$0xff]  }
 0x448   :  { %3794 = vmatpush1.bf16.msra.mxu0 %v4986_v43  ;;  %v5030_v43 = vld [vmem:[#allocation8 + $0x1a4] ss:$8 sps:$4 sm:$0xff]  }
 0x449   :  { %3795 = vmatprep.subr.bf16.mxu0 %v4991_v31  ;;  %v5028_v31 = vld [vmem:[#allocation8 + $0x1a0] ss:$8 sps:$4 sm:$0xff]  }
 0x44c   :  { %3796 = vmatpush1.bf16.msra.mxu0 %v4989_v35  ;;  %v5033_v35 = vld [vmem:[#allocation8 + $0x1b4] ss:$8 sps:$4 sm:$0xff]  }
 0x44d   :  { %3797 = vmatprep.subr.bf16.mxu0 %v4994_v38  ;;  %v5031_v38 = vld [vmem:[#allocation8 + $0x1b0] ss:$8 sps:$4 sm:$0xff]  }
 0x450   :  { %3798 = vmatpush1.bf16.msra.mxu0 %v4992_v39  ;;  %v5036_v39 = vld [vmem:[#allocation8 + $0x1c4] ss:$8 sps:$4 sm:$0xff]  }
 0x451   :  { %3799 = vmatprep.subr.bf16.mxu0 %v4997_v41  ;;  %v5034_v41 = vld [vmem:[#allocation8 + $0x1c0] ss:$8 sps:$4 sm:$0xff]  }
 0x454   :  { %3800 = vmatpush1.bf16.msra.mxu0 %v4995_v42  ;;  %v5039_v42 = vld [vmem:[#allocation8 + $0x1d4] ss:$8 sps:$4 sm:$0xff]  }
 0x455   :  { %3810 = vmatprep.subr.bf16.mxu0 %v5000_v45  ;;  %v5037_v45 = vld [vmem:[#allocation8 + $0x1d0] ss:$8 sps:$4 sm:$0xff]  }
 0x4ea   :  { %v3194_v2 = vpop.f32.mrb[8].mxu0 }
 0x4eb   :  { %v4512_v3 = vadd.f32 %v3194_v2, %v1682_v61  ;;  %v5518_v54 = vpop.f32.mrb[32].mxu1  ;;  %v3196_v49 = vpop.f32.mrb[9].mxu0 }
 0x4ec   :  { %v4513_v4 = vadd.f32 %v3196_v49, %v1686_v0  ;;  %v3360_v26 = vpop.f32.mrb[33].mxu1  ;;  %v3198_v6 = vpop.f32.mrb[10].mxu0  ;;  %v4514_v46 = vadd.f32 %v5518_v54, %v1690_v48 }
 0x4ed   :  { %v3365_v7 = vmax.f32 %v4512_v3, 0.0  ;;  %v4515_v8 = vadd.f32 %v3360_v26, %v1694_v1  ;;  %v3362_v9 = vpop.f32.mrb[34].mxu1  ;;  %v3199_v60 = vpop.f32.mrb[11].mxu0 }
 0x4ee   :  { %v3366_v11 = vmax.f32 %v4513_v4, 0.0  ;;  %v3363_v34 = vpop.f32.mrb[35].mxu1  ;;  %v3367_v50 = vmax.f32 %v4514_v46, 0.0 }
 0x4ef   :  { %v3368_v52 = vmax.f32 %v4515_v8, 0.0  ;;  %v3369_v62 = vpack.c.bf16 %v3365_v7, %v3365_v7  ;;  %v4446_v8 = vld [vmem:[%s5568_s12] ss:$0 sm:$0xff] }
 0x4f0   :  { %v3370_v14 = vpack.c.bf16 %v3366_v11, %v3366_v11  ;;  %v3371_v53 = vpack.c.bf16 %v3367_v50, %v3367_v50 }
 0x4f1   :  { %v3372_v13 = vpack.c.bf16 %v3368_v52, %v3368_v52 }
 0x4f2   :  { %3801 = vmatprep.mubr.bf16.mxu0 %v3370_v14 }
 0x4f3   :  { %3802 = vmatmul.mubr.bf16.vlgmr.msra.gmra.mrb[12].mxu0 %v3369_v62 }
 0x4f4   :  { %3811 = vmatpush1.bf16.msra.mxu0 %v4998_v63  ;;  %3842 = vmatprep.mubr.bf16.mxu0 %v3372_v13 }
 0x4f5   :  { %3812 = vmatprep.subr.bf16.mxu0 %v5003_v32 }
 0x4f8   :  { %3813 = vmatpush1.bf16.msra.mxu0 %v5001_v33 }
 0x4f9   :  { %3814 = vmatprep.subr.bf16.mxu0 %v5006_v15 }
 0x4fc   :  { %3815 = vmatpush1.bf16.msra.mxu0 %v5004_v5 }
 0x4fd   :  { %3816 = vmatprep.subr.bf16.mxu0 %v5009_v16 }
 0x500   :  { %3817 = vmatpush1.bf16.msra.mxu0 %v5007_v18 }
 0x501   :  { %3818 = vmatprep.subr.bf16.mxu0 %v5012_v36 }
 0x504   :  { %3819 = vmatpush1.bf16.msra.mxu0 %v5010_v19 }
 0x505   :  { %3820 = vmatprep.subr.bf16.mxu0 %v5015_v37 }
 0x508   :  { %3821 = vmatpush1.bf16.msra.mxu0 %v5013_v47 }
 0x509   :  { %3822 = vmatprep.subr.bf16.mxu0 %v5018_v20 }
 0x50c   :  { %3823 = vmatpush1.bf16.msra.mxu0 %v5016_v21 }
 0x50d   :  { %3824 = vmatprep.subr.bf16.mxu0 %v5021_v55 }
 0x510   :  { %3825 = vmatpush1.bf16.msra.mxu0 %v5019_v23 }
 0x511   :  { %3826 = vmatprep.subr.bf16.mxu0 %v5024_v24 }
 0x514   :  { %3827 = vmatpush1.bf16.msra.mxu0 %v5022_v25 }
 0x515   :  { %3828 = vmatprep.subr.bf16.mxu0 %v5027_v29 }
 0x518   :  { %3829 = vmatpush1.bf16.msra.mxu0 %v5025_v30 }
 0x519   :  { %3830 = vmatprep.subr.bf16.mxu0 %v5030_v43 }
 0x51c   :  { %3831 = vmatpush1.bf16.msra.mxu0 %v5028_v31 }
 0x51d   :  { %3832 = vmatprep.subr.bf16.mxu0 %v5033_v35 }
 0x520   :  { %3833 = vmatpush1.bf16.msra.mxu0 %v5031_v38 }
 0x521   :  { %3834 = vmatprep.subr.bf16.mxu0 %v5036_v39 }
 0x524   :  { %3835 = vmatpush1.bf16.msra.mxu0 %v5034_v41 }
 0x525   :  { %3836 = vmatprep.subr.bf16.mxu0 %v5039_v42 }
 0x528   :  { %3837 = vmatpush1.bf16.msra.mxu0 %v5037_v45 }
 0x529   :  { %3838 = vmatprep.subr.bf16.mxu0 %v5042_v58 }
 0x52c   :  { %3839 = vmatpush1.bf16.msra.mxu0 %v5040_v44 }
 0x52d   :  { %3840 = vmatprep.subr.bf16.mxu0 %v5045_v51 }
 0x530   :  { %3841 = vmatpush1.bf16.msra.mxu0 %v5043_v27 }
 0x533   :  { %3843 = vmatmul.mubr.bf16.vlgmr.msra.gmra.mrb[12].mxu0 %v3371_v53 }
 0x606   :  { %v3844_v61 = vpop.f32.mrb[12].mxu0 }
 0x607   :  { %v4516_v0 = vadd.f32 %v3844_v61, %v3442_v57  ;;  %v3846_v1 = vpop.f32.mrb[13].mxu0 }
 0x608   :  { %v4517_v2 = vadd.f32 %v3846_v1, %v3446_v59  ;;  %v3848_v3 = vpop.f32.mrb[14].mxu0 }
 0x609   :  { %v3851_v54 = vmax.f32 %v4516_v0, 0.0  ;;  %v3849_v49 = vpop.f32.mrb[15].mxu0 }
 0x60a   :  { %v3852_v4 = vmax.f32 %v4517_v2, 0.0 }
 0x60b   :  { %v3853_v6 = vpack.c.bf16 %v3851_v54, %v3851_v54 }
 0x60c   :  { %v3854_v26 = vpack.c.bf16 %v3852_v4, %v3852_v4 }
 0x60e   :  { %4022 = vmatprep.mubr.bf16.mxu1 %v3854_v26 }
 0x60f   :  { %4023 = vmatmul.mubr.bf16.vlgmr.msra.gmra.mrb[36].mxu1 %v3853_v6 }
 0x6e2   :  { %v4488_v7 = vpop.f32.mrb[36].mxu1 }
 0x6e3   :  { %v4489_v22 = vpop.f32.mrb[37].mxu1 }
 0x6e4   :  { %v4490_v28 = vadd.f32 %v4489_v22, %v4488_v7  ;;  %v4491_v9 = vpop.f32.mrb[38].mxu1 }
 0x6e5   :  { %v4492_v60 = vpop.f32.mrb[39].mxu1 }
 0x6e6   :  { %v4025_v11 = vadd.f32 %v4490_v28, %v4446_v8 }
 0x6e8   :  { %4031 = vst.msk [vmem:[#allocation9] sm:$0x3] %vm4030_vm4, %v4025_v11 }
 0x6e9   :  { %5139 = shalt.err (!%p5136_p0)
}
 0x6ea   :  { %s5140_s12 = scalar_lea.hbm %s5569_s13, 32 }
 0x6eb   :  { %p5141_p1 = scmp.ne.s32.totalorder %s5569_s13, %s5140_s12  ;;  %p5144_p2 = scmp.lt.u32.totalorder %s5140_s12, %s5569_s13 }
 0x6ed   :  { %p5146_p3 = pnand %p5144_p2, %p5141_p1 }
 0x6ef   :  { %5149 = shalt.err (!%p5146_p3)
}
 0x6f0   :  { %4041 = dma.vmem_to_hbm [thread:$0]  %s4039_s17, 32, %s5569_s13, [#allocation5]  }
 0x6f1   :  { %5154 = dma.done.wait [#allocation5], 32  }
 0x6f2   :  { %5155 = vsyncadd [#allocation5], 4294967264 }
 0x6f3   :  { %4045 = vsyncpa [#allocation4], 1 }
 0x6f4   :  { %4046 = vsyncpa [#allocation7], 1 }
 0x6f5   :  { %4047 = vsyncpa [#allocation5], 1 }

</bundles_post_ra>
